<compile_context>
chip_gen: v7x
topology: tpu7x:2x2x1
jax: 0.10.0
libtpu: 0.0.40
codegen_flags: <defaults>
</compile_context>

<pallas_src>
import functools
import math

import numpy as np
import jax
import jax.numpy as jnp
from jax.experimental import pallas as pl
from jax.experimental.pallas import tpu as pltpu

# bf16 operands for the MXU and the conv1/conv2 intermediate activations
# (review item).  Set to jnp.float32 to recover the strict 1e-4 check.
MXU_DTYPE = jnp.bfloat16
VMEM_LIMIT = 32 * 1024 * 1024       # conservative across v5e/v6e/v7x
_MAX_BLOCK_ROWS = 512               # MXU M saturates well before this


# -----------------------------------------------------------------------------
# Pallas kernel 1: complex 3x3 conv (padding=1, no bias) with optional fused
# BN+CReLU prologue (stats of the *previous* conv) and fused BN-statistics
# epilogue (stats of *this* conv).  B batch elements per grid step.
# -----------------------------------------------------------------------------
def _cconv_bn_kernel(x_ref, t_ref, p_ref, mask_ref, y_ref, s_ref, *, apply_bn):
    # x_ref   : (M, 2*Cin*W)            M = batch_block*HP rows (zero halo/pad rows)
    # t_ref   : (3, 2*Cin*W, 2*Cout*W)  block-Toeplitz weights, one per kh tap
    # p_ref   : (8, 2*Cin*W)            rows 0..3 = [mean|a_diag|a_off|beta] (if apply_bn)
    # mask_ref: (M, 1)                  1.0 on interior image rows, 0.0 on halo/pad rows
    # y_ref   : (M, 2*Cout*W)           canonical output (halo/pad rows zero)
    # s_ref   : (8, Cout*W)             rows 0..4 = BN partial sums of this block
    m_rows, lin = x_ref.shape
    lout = y_ref.shape[-1]
    cw_in, cw_out = lin // 2, lout // 2
    mask = mask_ref[...]                                    # (M, 1) f32

    x = x_ref[...]
    if apply_bn:
        # Fused BN-apply + ComplexReLU prologue (previous layer's BN), done on
        # the full-width slab; the real/imag cross term comes from one lane
        # rotation (XLU) instead of splitting the slab into halves.  All VPU
        # math stays f32 (v5e has no bf16 VALU).
        c = x.astype(jnp.float32) - p_ref[0:1, :]
        partner = pltpu.roll(c, cw_in, axis=1)              # [ci | cr]
        act = jnp.maximum(p_ref[1:2, :] * c + p_ref[2:3, :] * partner
                          + p_ref[3:4, :], 0.0)
        x = act * mask                                      # re-zero halo/pad rows
    x_mxu = x.astype(MXU_DTYPE)

    # One full-K dot per kh tap (kw taps, complex product and width padding are
    # folded into the Toeplitz weights).  Operands are the full aligned slab;
    # the +/-1 row shift is applied to the per-tap results.  Shifted-in edge
    # rows land on halo rows and are zeroed by the mask below.
    d0 = jnp.dot(x_mxu, t_ref[0], preferred_element_type=jnp.float32)
    d1 = jnp.dot(x_mxu, t_ref[1], preferred_element_type=jnp.float32)
    d2 = jnp.dot(x_mxu, t_ref[2], preferred_element_type=jnp.float32)
    zrow = jnp.zeros((1, lout), jnp.float32)
    acc = d1
    acc = acc + jnp.concatenate([zrow, d0[:m_rows - 1, :]], axis=0)  # y[g] += d0[g-1]
    acc = acc + jnp.concatenate([d2[1:, :], zrow], axis=0)           # y[g] += d2[g+1]
    acc = acc * mask                                        # zero halo/pad rows

    # BN partial sums of the conv output (computed from the f32 accumulator),
    # coalesced into a single (8, Cout*W) aligned store.
    ar = acc[:, :cw_out]
    ai = acc[:, cw_out:]
    s_ref[...] = jnp.concatenate(
        [jnp.sum(ar, axis=0, keepdims=True),
         jnp.sum(ai, axis=0, keepdims=True),
         jnp.sum(ar * ar, axis=0, keepdims=True),
         jnp.sum(ai * ai, axis=0, keepdims=True),
         jnp.sum(ar * ai, axis=0, keepdims=True),
         jnp.zeros((3, cw_out), jnp.float32)], axis=0)

    # Single full-block (unmasked) store of the canonical output slab.
    y_ref[...] = acc.astype(y_ref.dtype)


def cconv_bn(x_can, t, p, mask, *, block_rows, out_dtype, apply_bn):
    """Complex conv (+ optional fused BN/CReLU prologue) on the canonical layout."""
    rows, lin = x_can.shape
    lout = t.shape[-1]
    cw_out = lout // 2
    nsteps = rows // block_rows
    kernel = functools.partial(_cconv_bn_kernel, apply_bn=apply_bn)
    return pl.pallas_call(
        kernel,
        out_shape=(jax.ShapeDtypeStruct((rows, lout), out_dtype),
                   jax.ShapeDtypeStruct((nsteps, 8, cw_out), jnp.float32)),
        grid_spec=pltpu.PrefetchScalarGridSpec(
            num_scalar_prefetch=0,
            grid=(nsteps,),
            in_specs=[
                pl.BlockSpec((block_rows, lin), lambda i: (i, 0)),
                # Grid-invariant weights (constant index map -> no re-DMA).
                pl.BlockSpec((3, lin, lout), lambda i: (0, 0, 0)),
                pl.BlockSpec((8, lin), lambda i: (0, 0)),
                pl.BlockSpec((block_rows, 1), lambda i: (0, 0)),
            ],
            out_specs=[
                pl.BlockSpec((block_rows, lout), lambda i: (i, 0)),
                pl.BlockSpec((None, 8, cw_out), lambda i: (i, 0, 0)),
            ],
        ),
        compiler_params=pltpu.CompilerParams(
            # Batch blocks are independent.  On v7x, verify both TensorCores
            # engage; switch to pltpu.CORE_PARALLEL if xprof shows one idle.
            dimension_semantics=("parallel",),
            vmem_limit_bytes=VMEM_LIMIT,
        ),
    )(x_can, t, p, mask)


# -----------------------------------------------------------------------------
# Pallas kernel 2: final BN + ComplexReLU (after the last conv there is no
# following conv to fuse into).  Lane-dense, batch-blocked, single store.
# -----------------------------------------------------------------------------
def _bn_crelu_kernel(x_ref, p_ref, mask_ref, o_ref):
    L = x_ref.shape[-1]
    cw = L // 2
    c = x_ref[...].astype(jnp.float32) - p_ref[0:1, :]
    partner = pltpu.roll(c, cw, axis=1)
    y = jnp.maximum(p_ref[1:2, :] * c + p_ref[2:3, :] * partner + p_ref[3:4, :], 0.0)
    # Halo/pad rows zeroed so the output stays a valid canonical tensor
    # (directly consumable by a following conv when blocks are chained).
    o_ref[...] = (y * mask_ref[...]).astype(o_ref.dtype)


def bn_crelu(x_can, p, mask, *, block_rows):
    rows, L = x_can.shape
    nsteps = rows // block_rows
    return pl.pallas_call(
        _bn_crelu_kernel,
        out_shape=jax.ShapeDtypeStruct((rows, L), jnp.float32),
        grid_spec=pltpu.PrefetchScalarGridSpec(
            num_scalar_prefetch=0,
            grid=(nsteps,),
            in_specs=[
                pl.BlockSpec((block_rows, L), lambda i: (i, 0)),
                pl.BlockSpec((8, L), lambda i: (0, 0)),
                pl.BlockSpec((block_rows, 1), lambda i: (0, 0)),
            ],
            out_specs=pl.BlockSpec((block_rows, L), lambda i: (i, 0)),
        ),
        compiler_params=pltpu.CompilerParams(
            dimension_semantics=("parallel",),
            vmem_limit_bytes=VMEM_LIMIT,
        ),
    )(x_can, p, mask)


# -----------------------------------------------------------------------------
# Host-side glue (tiny): layout transforms, Toeplitz weight build, BN finalize.
# -----------------------------------------------------------------------------
def _round_up(x, m):
    return ((x + m - 1) // m) * m


def _pick_batch_block(N, hp_pad, lanes_max):
    """Largest divisor of N whose row block keeps M <= 512 rows and whose
    (double-buffered, f32 upper bound) in+out working set stays well inside
    the VMEM budget (v5e's scoped default is only 16 MiB -- stay conservative)."""
    best = 1
    for b in range(1, N + 1):
        if N % b:
            continue
        rows = b * hp_pad
        working = 2 * 2 * rows * lanes_max * 4
        if rows <= _MAX_BLOCK_ROWS and working <= VMEM_LIMIT // 4:
            best = b
    return best


def _assert_vmem_budget(lin, lout, block_rows):
    # Enforce the documented cap: the whole-matrix Toeplitz weights grow as
    # (2*C*W)^2; beyond roughly 1.5-2K lanes, K-tile the contraction over an
    # extra grid axis (or switch to a roll/im2col conv) instead.
    wbytes = 2 * 3 * lin * lout * np.dtype(MXU_DTYPE).itemsize
    abytes = 2 * 2 * block_rows * (lin + lout) * 4
    assert wbytes + abytes <= VMEM_LIMIT, (
        "Toeplitz weights + activation blocks exceed the VMEM budget; "
        "K-tile the contraction or shrink the batch block.")


def _interior_row_mask(batch_block, hp_pad, H):
    """(B*HP, 1) f32: 1.0 on interior image rows, 0.0 on halo/padding rows."""
    m = np.zeros((batch_block * hp_pad, 1), np.float32)
    for b in range(batch_block):
        m[b * hp_pad + 1: b * hp_pad + 1 + H, 0] = 1.0
    return jnp.asarray(m)


def build_toeplitz(wr, wi, W):
    """(3,3,Cin,Cout) complex conv weights -> (3, 2*Cin*W, 2*Cout*W) block-
    Toeplitz matrices folding the kw taps, the complex product and the width
    padding into the MXU contraction (chosen because C*W << VMEM limits)."""
    _, _, cin, cout = wr.shape
    c2i, c2o = 2 * cin, 2 * cout
    B = jnp.zeros((3, 3, c2i, c2o), jnp.float32)
    B = B.at[:, :, :cin, :cout].set(wr)
    B = B.at[:, :, :cin, cout:].set(wi)
    B = B.at[:, :, cin:, :cout].set(-wi)
    B = B.at[:, :, cin:, cout:].set(wr)
    wi_idx = jnp.arange(W)[:, None]
    wo_idx = jnp.arange(W)[None, :]
    kw = wi_idx - wo_idx + 1                           # (W, W)
    valid = (kw >= 0) & (kw <= 2)
    Bk = B[:, jnp.clip(kw, 0, 2)]                      # (3, W, W, 2Cin, 2Cout)
    Bk = Bk * valid[None, :, :, None, None]
    T = jnp.transpose(Bk, (0, 3, 1, 4, 2))             # (3, 2Cin, wi, 2Cout, wo)
    return T.reshape(3, c2i * W, c2o * W).astype(MXU_DTYPE)


def to_canonical(x_nchw, hp_pad):
    """NCHW complex -> (N*HP, 2*C*W) float32 canonical layout (zero halo rows)."""
    N, C, H, W = x_nchw.shape
    xr = jnp.real(x_nchw).astype(jnp.float32)
    xi = jnp.imag(x_nchw).astype(jnp.float32)
    x2 = jnp.concatenate([xr, xi], axis=1)                          # (N, 2C, H, W)
    x2 = jnp.transpose(x2, (0, 2, 1, 3)).reshape(N, H, 2 * C * W)   # lane = c*W + w
    x2 = jnp.pad(x2, ((0, 0), (1, hp_pad - H - 1), (0, 0)))         # halo + align pad
    return x2.reshape(N * hp_pad, 2 * C * W)


def from_canonical(z, C, H, W, hp_pad):
    """(N*HP, 2*C*W) float32 -> NCHW complex64."""
    N = z.shape[0] // hp_pad
    z = z.reshape(N, hp_pad, 2 * C, W)[:, 1:H + 1]
    z = jnp.transpose(z, (0, 2, 1, 3))                              # (N, 2C, H, W)
    return jax.lax.complex(z[:, :C], z[:, C:])


def complex_bn_affine(stats, gamma, beta, n_elems, C, W, eps=1e-5):
    """Finalize in-kernel BN partial sums into the per-channel 2x2 whitening
    affine (folded with gamma/beta), lane-expanded to the full-width (8, 2*C*W)
    layout [mean | a_diag | a_off | beta] consumed by the kernels.
    NOTE: single-pass E[x^2]-E[x]^2 in f32; conv outputs are ~zero-mean so
    cancellation is benign here, but use a centered pass if means grow large."""
    s = stats[:, :5, :].reshape(-1, 5, C, W).sum(axis=(0, 3))       # (5, C)
    n = float(n_elems)
    mr, mi = s[0] / n, s[1] / n
    vrr = s[2] / n - mr * mr + eps
    vii = s[3] / n - mi * mi + eps
    vri = s[4] / n - mr * mi
    det_sqrt = jnp.sqrt(vrr * vii - vri * vri)
    t = jnp.sqrt(vrr + vii + 2.0 * det_sqrt)
    inv_st = 1.0 / (det_sqrt * t)
    rrr = (vii + det_sqrt) * inv_st
    rii = (vrr + det_sqrt) * inv_st
    rri = -vri * inv_st
    g_rr, g_ii, g_ri = gamma[:, 0], gamma[:, 1], gamma[:, 2]
    arr = g_rr * rrr + g_ri * rri
    ari = g_rr * rri + g_ri * rii
    air = g_ri * rrr + g_ii * rri
    aii = g_ri * rri + g_ii * rii

    def lane2(a, b):                                                # -> (1, 2*C*W)
        return jnp.concatenate([jnp.repeat(a, W), jnp.repeat(b, W)])[None, :]

    p = jnp.concatenate(
        [lane2(mr, mi), lane2(arr, aii), lane2(ari, air),
         lane2(beta[:, 0], beta[:, 1]),
         jnp.zeros((4, 2 * C * W), jnp.float32)], axis=0)
    return p.astype(jnp.float32)


def double_conv_forward(x_complex_nchw, params):
    """Matches DoubleConv.forward: conv -> bn -> crelu -> conv -> bn -> crelu."""
    N, Cin, H, W = x_complex_nchw.shape
    Cmid = params["w1r"].shape[-1]
    Cout = params["w2r"].shape[-1]
    hp_pad = _round_up(H + 2, 8)
    l_in, l_mid, l_out = 2 * Cin * W, 2 * Cmid * W, 2 * Cout * W

    bblk = _pick_batch_block(N, hp_pad, max(l_in, l_mid, l_out))
    block_rows = bblk * hp_pad
    _assert_vmem_budget(max(l_in, l_mid), max(l_mid, l_out), block_rows)
    mask = _interior_row_mask(bblk, hp_pad, H)

    xc = to_canonical(x_complex_nchw, hp_pad)
    t1 = build_toeplitz(params["w1r"], params["w1i"], W)    # tiny; per-step precompute
    t2 = build_toeplitz(params["w2r"], params["w2i"], W)

    p0 = jnp.zeros((8, l_in), jnp.float32)                  # unused: no BN before conv1
    y1, s1 = cconv_bn(xc, t1, p0, mask, block_rows=block_rows,
                      out_dtype=MXU_DTYPE, apply_bn=False)
    p1 = complex_bn_affine(s1, params["g1"], params["b1"], N * H * W, Cmid, W)
    y2, s2 = cconv_bn(y1, t2, p1, mask, block_rows=block_rows,
                      out_dtype=MXU_DTYPE, apply_bn=True)   # BN1+CReLU fused prologue
    p2 = complex_bn_affine(s2, params["g2"], params["b2"], N * H * W, Cout, W)
    z = bn_crelu(y2, p2, mask, block_rows=block_rows)       # final BN2 + CReLU
    # TODO(synk): when DoubleConv blocks are chained (U-Net), keep the
    # canonical layout between blocks and skip this conversion at interior
    # boundaries.
    return from_canonical(z, Cout, H, W, hp_pad)


# -----------------------------------------------------------------------------
# Pure-JAX reference for verification
# -----------------------------------------------------------------------------
def _conv_ref(xr, xi, wr, wi):
    N, H, W, Cin = xr.shape
    xr_p = jnp.pad(xr, ((0, 0), (1, 1), (1, 1), (0, 0)))
    xi_p = jnp.pad(xi, ((0, 0), (1, 1), (1, 1), (0, 0)))
    out_r = jnp.zeros((N, H, W, wr.shape[-1]), jnp.float32)
    out_i = jnp.zeros_like(out_r)
    for kh in range(3):
        for kw in range(3):
            pr = xr_p[:, kh:kh + H, kw:kw + W, :]
            pi = xi_p[:, kh:kh + H, kw:kw + W, :]
            out_r += (jnp.einsum("nhwc,co->nhwo", pr, wr[kh, kw])
                      - jnp.einsum("nhwc,co->nhwo", pi, wi[kh, kw]))
            out_i += (jnp.einsum("nhwc,co->nhwo", pr, wi[kh, kw])
                      + jnp.einsum("nhwc,co->nhwo", pi, wr[kh, kw]))
    return out_r, out_i


def _bn_crelu_ref(yr, yi, gamma, beta, eps=1e-5):
    mr = jnp.mean(yr, axis=(0, 1, 2))
    mi = jnp.mean(yi, axis=(0, 1, 2))
    cr = yr - mr
    ci = yi - mi
    vrr = jnp.mean(cr * cr, axis=(0, 1, 2)) + eps
    vii = jnp.mean(ci * ci, axis=(0, 1, 2)) + eps
    vri = jnp.mean(cr * ci, axis=(0, 1, 2))
    s = jnp.sqrt(vrr * vii - vri * vri)
    t = jnp.sqrt(vrr + vii + 2.0 * s)
    inv_st = 1.0 / (s * t)
    rrr = (vii + s) * inv_st
    rii = (vrr + s) * inv_st
    rri = -vri * inv_st
    g_rr, g_ii, g_ri = gamma[:, 0], gamma[:, 1], gamma[:, 2]
    arr = g_rr * rrr + g_ri * rri
    ari = g_rr * rri + g_ri * rii
    air = g_ri * rrr + g_ii * rri
    aii = g_ri * rri + g_ii * rii
    br, bi = beta[:, 0], beta[:, 1]
    return (jnp.maximum(arr * cr + ari * ci + br, 0.0),
            jnp.maximum(air * cr + aii * ci + bi, 0.0))


def _reference_forward(x_complex_nchw, params):
    x_nhwc = jnp.transpose(x_complex_nchw, (0, 2, 3, 1))
    xr = jnp.real(x_nhwc).astype(jnp.float32)
    xi = jnp.imag(x_nhwc).astype(jnp.float32)
    yr, yi = _conv_ref(xr, xi, params["w1r"], params["w1i"])
    yr, yi = _bn_crelu_ref(yr, yi, params["g1"], params["b1"])
    yr, yi = _conv_ref(yr, yi, params["w2r"], params["w2i"])
    yr, yi = _bn_crelu_ref(yr, yi, params["g2"], params["b2"])
    return jnp.transpose(jax.lax.complex(yr, yi), (0, 3, 1, 2))


if __name__ == "__main__":
    key = jax.random.PRNGKey(0)
    ks = jax.random.split(key, 6)

    N, Cin, H, W = 2, 4, 16, 16
    Cout = 8                      # mid_channels defaults to out_channels
    Cmid = Cout

    xr0 = jax.random.normal(ks[0], (N, Cin, H, W), jnp.float32)
    xi0 = jax.random.normal(ks[1], (N, Cin, H, W), jnp.float32)
    x = jax.lax.complex(xr0, xi0)             # NCHW complex64, like PyTorch

    sc1 = 1.0 / math.sqrt(Cin * 9)
    sc2 = 1.0 / math.sqrt(Cmid * 9)
    inv_sqrt2 = 1.0 / math.sqrt(2.0)
    params = {
        "w1r": jax.random.normal(ks[2], (3, 3, Cin, Cmid), jnp.float32) * sc1,
        "w1i": jax.random.normal(ks[3], (3, 3, Cin, Cmid), jnp.float32) * sc1,
        "w2r": jax.random.normal(ks[4], (3, 3, Cmid, Cout), jnp.float32) * sc2,
        "w2i": jax.random.normal(ks[5], (3, 3, Cmid, Cout), jnp.float32) * sc2,
        "g1": jnp.tile(jnp.array([[inv_sqrt2, inv_sqrt2, 0.0]], jnp.float32),
                       (Cmid, 1)),
        "b1": jnp.zeros((Cmid, 2), jnp.float32),
        "g2": jnp.tile(jnp.array([[inv_sqrt2, inv_sqrt2, 0.0]], jnp.float32),
                       (Cout, 1)),
        "b2": jnp.zeros((Cout, 2), jnp.float32),
    }

    out = jax.jit(double_conv_forward)(x, params)
    out = jax.block_until_ready(out)

    ref = _reference_forward(x, params)
    assert out.shape == (N, Cout, H, W) and out.dtype == jnp.complex64

    # Tolerance is selected from the MXU operand dtype (review item: the bf16
    # flip is an expected tolerance change, not a bug).  Expected |err| with
    # bf16 operands + bf16 intermediates is <~ 2e-2 on this unit-scale output.
    if MXU_DTYPE == jnp.float32:
        atol = rtol = 1e-4
    else:
        atol = rtol = 1e-1
    err_r = jnp.abs(jnp.real(out) - jnp.real(ref))
    err_i = jnp.abs(jnp.imag(out) - jnp.imag(ref))
    assert jnp.allclose(jnp.real(out), jnp.real(ref), atol=atol, rtol=rtol)
    assert jnp.allclose(jnp.imag(out), jnp.imag(ref), atol=atol, rtol=rtol)
    assert float(jnp.mean(err_r)) < 1e-2 and float(jnp.mean(err_i)) < 1e-2

    print("KERNEL_OK")
</pallas_src>

<mosaic_0001>
module attributes {stable_mosaic.version = 11 : i64} {
  func.func @_cconv_bn_kernel(%arg0: i32, %arg1: memref<48x128xf32, #tpu.memory_space<vmem>>, %arg2: memref<3x128x256xbf16, #tpu.memory_space<vmem>>, %arg3: memref<8x128xf32, #tpu.memory_space<vmem>>, %arg4: memref<48x1xf32, #tpu.memory_space<vmem>>, %arg5: memref<48x256xbf16, #tpu.memory_space<vmem>>, %arg6: memref<1x8x128xf32, #tpu.memory_space<vmem>>) attributes {dimension_semantics = [#tpu.dimension_semantics<parallel>], iteration_bounds = array<i64: 1>, scalar_prefetch = 0 : i64, scratch_operands = 0 : i64, tpu.core_type = #tpu.core_type<tc>, window_params = [{transform_indices = @transform_0, window_bounds = array<i64: 48, 128>}, {pipeline_mode = #tpu.pipeline_mode<synchronous>, transform_indices = @transform_1, window_bounds = array<i64: 3, 128, 256>}, {pipeline_mode = #tpu.pipeline_mode<synchronous>, transform_indices = @transform_2, window_bounds = array<i64: 8, 128>}, {pipeline_mode = #tpu.pipeline_mode<synchronous>, transform_indices = @transform_3, window_bounds = array<i64: 48, 1>}, {transform_indices = @transform_4, window_bounds = array<i64: 48, 256>}, {transform_indices = @transform_5, window_bounds = array<i64: 1, 8, 128>}]} {
    %c0 = arith.constant 0 : index
    %c0_0 = arith.constant 0 : index
    %0 = vector.load %arg4[%c0, %c0_0] : memref<48x1xf32, #tpu.memory_space<vmem>>, vector<48x1xf32>
    %c0_1 = arith.constant 0 : index
    %c0_2 = arith.constant 0 : index
    %1 = vector.load %arg1[%c0_1, %c0_2] : memref<48x128xf32, #tpu.memory_space<vmem>>, vector<48x128xf32>
    %2 = arith.truncf %1 : vector<48x128xf32> to vector<48x128xbf16>
    %c0_3 = arith.constant 0 : index
    %c0_4 = arith.constant 0 : index
    %c0_5 = arith.constant 0 : index
    %3 = vector.load %arg2[%c0_3, %c0_4, %c0_5] : memref<3x128x256xbf16, #tpu.memory_space<vmem>>, vector<1x128x256xbf16>
    %4 = vector.shape_cast %3 : vector<1x128x256xbf16> to vector<128x256xbf16>
    %cst = arith.constant dense<0.000000e+00> : vector<48x256xf32>
    %5 = tpu.matmul %2, %4, %cst {dimension_numbers = #tpu.dot_dimension_numbers<[1], [0], [0], [1], [0, 0, 1, 1], [], []>} : vector<48x128xbf16>, vector<128x256xbf16>, vector<48x256xf32> -> vector<48x256xf32>
    %c1 = arith.constant 1 : index
    %c0_6 = arith.constant 0 : index
    %c0_7 = arith.constant 0 : index
    %6 = vector.load %arg2[%c1, %c0_6, %c0_7] : memref<3x128x256xbf16, #tpu.memory_space<vmem>>, vector<1x128x256xbf16>
    %7 = vector.shape_cast %6 : vector<1x128x256xbf16> to vector<128x256xbf16>
    %cst_8 = arith.constant dense<0.000000e+00> : vector<48x256xf32>
    %8 = tpu.matmul %2, %7, %cst_8 {dimension_numbers = #tpu.dot_dimension_numbers<[1], [0], [0], [1], [0, 0, 1, 1], [], []>} : vector<48x128xbf16>, vector<128x256xbf16>, vector<48x256xf32> -> vector<48x256xf32>
    %c2 = arith.constant 2 : index
    %c0_9 = arith.constant 0 : index
    %c0_10 = arith.constant 0 : index
    %9 = vector.load %arg2[%c2, %c0_9, %c0_10] : memref<3x128x256xbf16, #tpu.memory_space<vmem>>, vector<1x128x256xbf16>
    %10 = vector.shape_cast %9 : vector<1x128x256xbf16> to vector<128x256xbf16>
    %cst_11 = arith.constant dense<0.000000e+00> : vector<48x256xf32>
    %11 = tpu.matmul %2, %10, %cst_11 {dimension_numbers = #tpu.dot_dimension_numbers<[1], [0], [0], [1], [0, 0, 1, 1], [], []>} : vector<48x128xbf16>, vector<128x256xbf16>, vector<48x256xf32> -> vector<48x256xf32>
    %cst_12 = arith.constant 0.000000e+00 : f32
    %12 = vector.broadcast %cst_12 : f32 to vector<1x256xf32>
    %13 = vector.extract_strided_slice %5 {offsets = [0, 0], sizes = [47, 256], strides = [1, 1]} : vector<48x256xf32> to vector<47x256xf32>
    %14 = tpu.concatenate %12, %13 in 0 : vector<1x256xf32>, vector<47x256xf32> -> vector<48x256xf32>
    %15 = arith.addf %8, %14 : vector<48x256xf32>
    %16 = vector.extract_strided_slice %11 {offsets = [1, 0], sizes = [47, 256], strides = [1, 1]} : vector<48x256xf32> to vector<47x256xf32>
    %17 = tpu.concatenate %16, %12 in 0 : vector<47x256xf32>, vector<1x256xf32> -> vector<48x256xf32>
    %18 = arith.addf %15, %17 : vector<48x256xf32>
    %19 = vector.broadcast %0 : vector<48x1xf32> to vector<48x256xf32>
    %20 = arith.mulf %18, %19 : vector<48x256xf32>
    %21 = vector.extract_strided_slice %20 {offsets = [0, 0], sizes = [48, 128], strides = [1, 1]} : vector<48x256xf32> to vector<48x128xf32>
    %22 = vector.extract_strided_slice %20 {offsets = [0, 128], sizes = [48, 128], strides = [1, 1]} : vector<48x256xf32> to vector<48x128xf32>
    %cst_13 = arith.constant dense<0.000000e+00> : vector<128xf32>
    %23 = vector.multi_reduction <add>, %21, %cst_13 [0] : vector<48x128xf32> to vector<128xf32>
    %24 = vector.shape_cast %23 : vector<128xf32> to vector<1x128xf32>
    %cst_14 = arith.constant dense<0.000000e+00> : vector<128xf32>
    %25 = vector.multi_reduction <add>, %22, %cst_14 [0] : vector<48x128xf32> to vector<128xf32>
    %26 = vector.shape_cast %25 : vector<128xf32> to vector<1x128xf32>
    %27 = arith.mulf %21, %21 : vector<48x128xf32>
    %cst_15 = arith.constant dense<0.000000e+00> : vector<128xf32>
    %28 = vector.multi_reduction <add>, %27, %cst_15 [0] : vector<48x128xf32> to vector<128xf32>
    %29 = vector.shape_cast %28 : vector<128xf32> to vector<1x128xf32>
    %30 = arith.mulf %22, %22 : vector<48x128xf32>
    %cst_16 = arith.constant dense<0.000000e+00> : vector<128xf32>
    %31 = vector.multi_reduction <add>, %30, %cst_16 [0] : vector<48x128xf32> to vector<128xf32>
    %32 = vector.shape_cast %31 : vector<128xf32> to vector<1x128xf32>
    %33 = arith.mulf %21, %22 : vector<48x128xf32>
    %cst_17 = arith.constant dense<0.000000e+00> : vector<128xf32>
    %34 = vector.multi_reduction <add>, %33, %cst_17 [0] : vector<48x128xf32> to vector<128xf32>
    %35 = vector.shape_cast %34 : vector<128xf32> to vector<1x128xf32>
    %cst_18 = arith.constant 0.000000e+00 : f32
    %36 = vector.broadcast %cst_18 : f32 to vector<3x128xf32>
    %37 = tpu.concatenate %24, %26, %29, %32, %35, %36 in 0 : vector<1x128xf32>, vector<1x128xf32>, vector<1x128xf32>, vector<1x128xf32>, vector<1x128xf32>, vector<3x128xf32> -> vector<8x128xf32>
    %c0_19 = arith.constant 0 : index
    %c0_20 = arith.constant 0 : index
    %c0_21 = arith.constant 0 : index
    %38 = vector.load %arg6[%c0_19, %c0_20, %c0_21] : memref<1x8x128xf32, #tpu.memory_space<vmem>>, vector<1x8x128xf32>
    %39 = vector.shape_cast %38 : vector<1x8x128xf32> to vector<8x128xf32>
    %40 = vector.shape_cast %37 : vector<8x128xf32> to vector<1x8x128xf32>
    tpu.vector_store %arg6[%c0_19, %c0_20, %c0_21], %40 {strides = array<i32>} : memref<1x8x128xf32, #tpu.memory_space<vmem>>, vector<1x8x128xf32>,
    %41 = arith.truncf %20 : vector<48x256xf32> to vector<48x256xbf16>
    %c0_22 = arith.constant 0 : index
    %c0_23 = arith.constant 0 : index
    %42 = vector.load %arg5[%c0_22, %c0_23] : memref<48x256xbf16, #tpu.memory_space<vmem>>, vector<48x256xbf16>
    tpu.vector_store %arg5[%c0_22, %c0_23], %41 {strides = array<i32>} : memref<48x256xbf16, #tpu.memory_space<vmem>>, vector<48x256xbf16>,
    return
  }
  func.func @transform_0(%arg0: i32) -> (i32, i32) {
    %c0_i32 = arith.constant 0 : i32
    %c0_i32_0 = arith.constant 0 : i32
    return %arg0, %c0_i32 : i32, i32
  }
  func.func @transform_1(%arg0: i32) -> (i32, i32, i32) {
    %c0_i32 = arith.constant 0 : i32
    %c0_i32_0 = arith.constant 0 : i32
    %c0_i32_1 = arith.constant 0 : i32
    %c0_i32_2 = arith.constant 0 : i32
    return %c0_i32, %c0_i32_0, %c0_i32_1 : i32, i32, i32
  }
  func.func @transform_2(%arg0: i32) -> (i32, i32) {
    %c0_i32 = arith.constant 0 : i32
    %c0_i32_0 = arith.constant 0 : i32
    %c0_i32_1 = arith.constant 0 : i32
    return %c0_i32, %c0_i32_0 : i32, i32
  }
  func.func @transform_3(%arg0: i32) -> (i32, i32) {
    %c0_i32 = arith.constant 0 : i32
    %c0_i32_0 = arith.constant 0 : i32
    %c0_i32_1 = arith.constant 0 : i32
    return %c0_i32, %c0_i32_0 : i32, i32
  }
  func.func @transform_4(%arg0: i32) -> (i32, i32) {
    %c0_i32 = arith.constant 0 : i32
    %c0_i32_0 = arith.constant 0 : i32
    return %arg0, %c0_i32 : i32, i32
  }
  func.func @transform_5(%arg0: i32) -> (i32, i32, i32) {
    %c0_i32 = arith.constant 0 : i32
    %c0_i32_0 = arith.constant 0 : i32
    %c0_i32_1 = arith.constant 0 : i32
    return %arg0, %c0_i32, %c0_i32_0 : i32, i32, i32
  }
}

module attributes {stable_mosaic.version = 11 : i64} {
  func.func @_cconv_bn_kernel(%arg0: i32, %arg1: memref<48x256xbf16, #tpu.memory_space<vmem>>, %arg2: memref<3x256x256xbf16, #tpu.memory_space<vmem>>, %arg3: memref<8x256xf32, #tpu.memory_space<vmem>>, %arg4: memref<48x1xf32, #tpu.memory_space<vmem>>, %arg5: memref<48x256xbf16, #tpu.memory_space<vmem>>, %arg6: memref<1x8x128xf32, #tpu.memory_space<vmem>>) attributes {dimension_semantics = [#tpu.dimension_semantics<parallel>], iteration_bounds = array<i64: 1>, scalar_prefetch = 0 : i64, scratch_operands = 0 : i64, tpu.core_type = #tpu.core_type<tc>, window_params = [{transform_indices = @transform_0, window_bounds = array<i64: 48, 256>}, {pipeline_mode = #tpu.pipeline_mode<synchronous>, transform_indices = @transform_1, window_bounds = array<i64: 3, 256, 256>}, {pipeline_mode = #tpu.pipeline_mode<synchronous>, transform_indices = @transform_2, window_bounds = array<i64: 8, 256>}, {pipeline_mode = #tpu.pipeline_mode<synchronous>, transform_indices = @transform_3, window_bounds = array<i64: 48, 1>}, {transform_indices = @transform_4, window_bounds = array<i64: 48, 256>}, {transform_indices = @transform_5, window_bounds = array<i64: 1, 8, 128>}]} {
    %c0 = arith.constant 0 : index
    %c0_0 = arith.constant 0 : index
    %0 = vector.load %arg4[%c0, %c0_0] : memref<48x1xf32, #tpu.memory_space<vmem>>, vector<48x1xf32>
    %c0_1 = arith.constant 0 : index
    %c0_2 = arith.constant 0 : index
    %1 = vector.load %arg1[%c0_1, %c0_2] : memref<48x256xbf16, #tpu.memory_space<vmem>>, vector<48x256xbf16>
    %2 = arith.extf %1 : vector<48x256xbf16> to vector<48x256xf32>
    %c0_3 = arith.constant 0 : index
    %c0_4 = arith.constant 0 : index
    %3 = vector.load %arg3[%c0_3, %c0_4] : memref<8x256xf32, #tpu.memory_space<vmem>>, vector<1x256xf32>
    %4 = vector.broadcast %3 : vector<1x256xf32> to vector<48x256xf32>
    %5 = arith.subf %2, %4 : vector<48x256xf32>
    %c128_i32 = arith.constant 128 : i32
    %6 = tpu.dynamic_rotate %5 by %c128_i32 dim 1 : vector<48x256xf32>, i32 -> vector<48x256xf32>
    %c1 = arith.constant 1 : index
    %c0_5 = arith.constant 0 : index
    %7 = vector.load %arg3[%c1, %c0_5] : memref<8x256xf32, #tpu.memory_space<vmem>>, vector<1x256xf32>
    %8 = vector.broadcast %7 : vector<1x256xf32> to vector<48x256xf32>
    %9 = arith.mulf %8, %5 : vector<48x256xf32>
    %c2 = arith.constant 2 : index
    %c0_6 = arith.constant 0 : index
    %10 = vector.load %arg3[%c2, %c0_6] : memref<8x256xf32, #tpu.memory_space<vmem>>, vector<1x256xf32>
    %11 = vector.broadcast %10 : vector<1x256xf32> to vector<48x256xf32>
    %12 = arith.mulf %11, %6 : vector<48x256xf32>
    %13 = arith.addf %9, %12 : vector<48x256xf32>
    %c3 = arith.constant 3 : index
    %c0_7 = arith.constant 0 : index
    %14 = vector.load %arg3[%c3, %c0_7] : memref<8x256xf32, #tpu.memory_space<vmem>>, vector<1x256xf32>
    %15 = vector.broadcast %14 : vector<1x256xf32> to vector<48x256xf32>
    %16 = arith.addf %13, %15 : vector<48x256xf32>
    %cst = arith.constant 0.000000e+00 : f32
    %17 = vector.broadcast %cst : f32 to vector<48x256xf32>
    %18 = arith.maximumf %16, %17 : vector<48x256xf32>
    %19 = vector.broadcast %0 : vector<48x1xf32> to vector<48x256xf32>
    %20 = arith.mulf %18, %19 : vector<48x256xf32>
    %21 = arith.truncf %20 : vector<48x256xf32> to vector<48x256xbf16>
    %c0_8 = arith.constant 0 : index
    %c0_9 = arith.constant 0 : index
    %c0_10 = arith.constant 0 : index
    %22 = vector.load %arg2[%c0_8, %c0_9, %c0_10] : memref<3x256x256xbf16, #tpu.memory_space<vmem>>, vector<1x256x256xbf16>
    %23 = vector.shape_cast %22 : vector<1x256x256xbf16> to vector<256x256xbf16>
    %cst_11 = arith.constant dense<0.000000e+00> : vector<48x256xf32>
    %24 = tpu.matmul %21, %23, %cst_11 {dimension_numbers = #tpu.dot_dimension_numbers<[1], [0], [0], [1], [0, 0, 1, 1], [], []>} : vector<48x256xbf16>, vector<256x256xbf16>, vector<48x256xf32> -> vector<48x256xf32>
    %c1_12 = arith.constant 1 : index
    %c0_13 = arith.constant 0 : index
    %c0_14 = arith.constant 0 : index
    %25 = vector.load %arg2[%c1_12, %c0_13, %c0_14] : memref<3x256x256xbf16, #tpu.memory_space<vmem>>, vector<1x256x256xbf16>
    %26 = vector.shape_cast %25 : vector<1x256x256xbf16> to vector<256x256xbf16>
    %cst_15 = arith.constant dense<0.000000e+00> : vector<48x256xf32>
    %27 = tpu.matmul %21, %26, %cst_15 {dimension_numbers = #tpu.dot_dimension_numbers<[1], [0], [0], [1], [0, 0, 1, 1], [], []>} : vector<48x256xbf16>, vector<256x256xbf16>, vector<48x256xf32> -> vector<48x256xf32>
    %c2_16 = arith.constant 2 : index
    %c0_17 = arith.constant 0 : index
    %c0_18 = arith.constant 0 : index
    %28 = vector.load %arg2[%c2_16, %c0_17, %c0_18] : memref<3x256x256xbf16, #tpu.memory_space<vmem>>, vector<1x256x256xbf16>
    %29 = vector.shape_cast %28 : vector<1x256x256xbf16> to vector<256x256xbf16>
    %cst_19 = arith.constant dense<0.000000e+00> : vector<48x256xf32>
    %30 = tpu.matmul %21, %29, %cst_19 {dimension_numbers = #tpu.dot_dimension_numbers<[1], [0], [0], [1], [0, 0, 1, 1], [], []>} : vector<48x256xbf16>, vector<256x256xbf16>, vector<48x256xf32> -> vector<48x256xf32>
    %cst_20 = arith.constant 0.000000e+00 : f32
    %31 = vector.broadcast %cst_20 : f32 to vector<1x256xf32>
    %32 = vector.extract_strided_slice %24 {offsets = [0, 0], sizes = [47, 256], strides = [1, 1]} : vector<48x256xf32> to vector<47x256xf32>
    %33 = tpu.concatenate %31, %32 in 0 : vector<1x256xf32>, vector<47x256xf32> -> vector<48x256xf32>
    %34 = arith.addf %27, %33 : vector<48x256xf32>
    %35 = vector.extract_strided_slice %30 {offsets = [1, 0], sizes = [47, 256], strides = [1, 1]} : vector<48x256xf32> to vector<47x256xf32>
    %36 = tpu.concatenate %35, %31 in 0 : vector<47x256xf32>, vector<1x256xf32> -> vector<48x256xf32>
    %37 = arith.addf %34, %36 : vector<48x256xf32>
    %38 = vector.broadcast %0 : vector<48x1xf32> to vector<48x256xf32>
    %39 = arith.mulf %37, %38 : vector<48x256xf32>
    %40 = vector.extract_strided_slice %39 {offsets = [0, 0], sizes = [48, 128], strides = [1, 1]} : vector<48x256xf32> to vector<48x128xf32>
    %41 = vector.extract_strided_slice %39 {offsets = [0, 128], sizes = [48, 128], strides = [1, 1]} : vector<48x256xf32> to vector<48x128xf32>
    %cst_21 = arith.constant dense<0.000000e+00> : vector<128xf32>
    %42 = vector.multi_reduction <add>, %40, %cst_21 [0] : vector<48x128xf32> to vector<128xf32>
    %43 = vector.shape_cast %42 : vector<128xf32> to vector<1x128xf32>
    %cst_22 = arith.constant dense<0.000000e+00> : vector<128xf32>
    %44 = vector.multi_reduction <add>, %41, %cst_22 [0] : vector<48x128xf32> to vector<128xf32>
    %45 = vector.shape_cast %44 : vector<128xf32> to vector<1x128xf32>
    %46 = arith.mulf %40, %40 : vector<48x128xf32>
    %cst_23 = arith.constant dense<0.000000e+00> : vector<128xf32>
    %47 = vector.multi_reduction <add>, %46, %cst_23 [0] : vector<48x128xf32> to vector<128xf32>
    %48 = vector.shape_cast %47 : vector<128xf32> to vector<1x128xf32>
    %49 = arith.mulf %41, %41 : vector<48x128xf32>
    %cst_24 = arith.constant dense<0.000000e+00> : vector<128xf32>
    %50 = vector.multi_reduction <add>, %49, %cst_24 [0] : vector<48x128xf32> to vector<128xf32>
    %51 = vector.shape_cast %50 : vector<128xf32> to vector<1x128xf32>
    %52 = arith.mulf %40, %41 : vector<48x128xf32>
    %cst_25 = arith.constant dense<0.000000e+00> : vector<128xf32>
    %53 = vector.multi_reduction <add>, %52, %cst_25 [0] : vector<48x128xf32> to vector<128xf32>
    %54 = vector.shape_cast %53 : vector<128xf32> to vector<1x128xf32>
    %cst_26 = arith.constant 0.000000e+00 : f32
    %55 = vector.broadcast %cst_26 : f32 to vector<3x128xf32>
    %56 = tpu.concatenate %43, %45, %48, %51, %54, %55 in 0 : vector<1x128xf32>, vector<1x128xf32>, vector<1x128xf32>, vector<1x128xf32>, vector<1x128xf32>, vector<3x128xf32> -> vector<8x128xf32>
    %c0_27 = arith.constant 0 : index
    %c0_28 = arith.constant 0 : index
    %c0_29 = arith.constant 0 : index
    %57 = vector.load %arg6[%c0_27, %c0_28, %c0_29] : memref<1x8x128xf32, #tpu.memory_space<vmem>>, vector<1x8x128xf32>
    %58 = vector.shape_cast %57 : vector<1x8x128xf32> to vector<8x128xf32>
    %59 = vector.shape_cast %56 : vector<8x128xf32> to vector<1x8x128xf32>
    tpu.vector_store %arg6[%c0_27, %c0_28, %c0_29], %59 {strides = array<i32>} : memref<1x8x128xf32, #tpu.memory_space<vmem>>, vector<1x8x128xf32>,
    %60 = arith.truncf %39 : vector<48x256xf32> to vector<48x256xbf16>
    %c0_30 = arith.constant 0 : index
    %c0_31 = arith.constant 0 : index
    %61 = vector.load %arg5[%c0_30, %c0_31] : memref<48x256xbf16, #tpu.memory_space<vmem>>, vector<48x256xbf16>
    tpu.vector_store %arg5[%c0_30, %c0_31], %60 {strides = array<i32>} : memref<48x256xbf16, #tpu.memory_space<vmem>>, vector<48x256xbf16>,
    return
  }
  func.func @transform_0(%arg0: i32) -> (i32, i32) {
    %c0_i32 = arith.constant 0 : i32
    %c0_i32_0 = arith.constant 0 : i32
    return %arg0, %c0_i32 : i32, i32
  }
  func.func @transform_1(%arg0: i32) -> (i32, i32, i32) {
    %c0_i32 = arith.constant 0 : i32
    %c0_i32_0 = arith.constant 0 : i32
    %c0_i32_1 = arith.constant 0 : i32
    %c0_i32_2 = arith.constant 0 : i32
    return %c0_i32, %c0_i32_0, %c0_i32_1 : i32, i32, i32
  }
  func.func @transform_2(%arg0: i32) -> (i32, i32) {
    %c0_i32 = arith.constant 0 : i32
    %c0_i32_0 = arith.constant 0 : i32
    %c0_i32_1 = arith.constant 0 : i32
    return %c0_i32, %c0_i32_0 : i32, i32
  }
  func.func @transform_3(%arg0: i32) -> (i32, i32) {
    %c0_i32 = arith.constant 0 : i32
    %c0_i32_0 = arith.constant 0 : i32
    %c0_i32_1 = arith.constant 0 : i32
    return %c0_i32, %c0_i32_0 : i32, i32
  }
  func.func @transform_4(%arg0: i32) -> (i32, i32) {
    %c0_i32 = arith.constant 0 : i32
    %c0_i32_0 = arith.constant 0 : i32
    return %arg0, %c0_i32 : i32, i32
  }
  func.func @transform_5(%arg0: i32) -> (i32, i32, i32) {
    %c0_i32 = arith.constant 0 : i32
    %c0_i32_0 = arith.constant 0 : i32
    %c0_i32_1 = arith.constant 0 : i32
    return %arg0, %c0_i32, %c0_i32_0 : i32, i32, i32
  }
}

module attributes {stable_mosaic.version = 11 : i64} {
  func.func @_bn_crelu_kernel(%arg0: i32, %arg1: memref<48x256xbf16, #tpu.memory_space<vmem>>, %arg2: memref<8x256xf32, #tpu.memory_space<vmem>>, %arg3: memref<48x1xf32, #tpu.memory_space<vmem>>, %arg4: memref<48x256xf32, #tpu.memory_space<vmem>>) attributes {dimension_semantics = [#tpu.dimension_semantics<parallel>], iteration_bounds = array<i64: 1>, scalar_prefetch = 0 : i64, scratch_operands = 0 : i64, tpu.core_type = #tpu.core_type<tc>, window_params = [{transform_indices = @transform_0, window_bounds = array<i64: 48, 256>}, {pipeline_mode = #tpu.pipeline_mode<synchronous>, transform_indices = @transform_1, window_bounds = array<i64: 8, 256>}, {pipeline_mode = #tpu.pipeline_mode<synchronous>, transform_indices = @transform_2, window_bounds = array<i64: 48, 1>}, {transform_indices = @transform_3, window_bounds = array<i64: 48, 256>}]} {
    %c0 = arith.constant 0 : index
    %c0_0 = arith.constant 0 : index
    %0 = vector.load %arg1[%c0, %c0_0] : memref<48x256xbf16, #tpu.memory_space<vmem>>, vector<48x256xbf16>
    %1 = arith.extf %0 : vector<48x256xbf16> to vector<48x256xf32>
    %c0_1 = arith.constant 0 : index
    %c0_2 = arith.constant 0 : index
    %2 = vector.load %arg2[%c0_1, %c0_2] : memref<8x256xf32, #tpu.memory_space<vmem>>, vector<1x256xf32>
    %3 = vector.broadcast %2 : vector<1x256xf32> to vector<48x256xf32>
    %4 = arith.subf %1, %3 : vector<48x256xf32>
    %c128_i32 = arith.constant 128 : i32
    %5 = tpu.dynamic_rotate %4 by %c128_i32 dim 1 : vector<48x256xf32>, i32 -> vector<48x256xf32>
    %c1 = arith.constant 1 : index
    %c0_3 = arith.constant 0 : index
    %6 = vector.load %arg2[%c1, %c0_3] : memref<8x256xf32, #tpu.memory_space<vmem>>, vector<1x256xf32>
    %7 = vector.broadcast %6 : vector<1x256xf32> to vector<48x256xf32>
    %8 = arith.mulf %7, %4 : vector<48x256xf32>
    %c2 = arith.constant 2 : index
    %c0_4 = arith.constant 0 : index
    %9 = vector.load %arg2[%c2, %c0_4] : memref<8x256xf32, #tpu.memory_space<vmem>>, vector<1x256xf32>
    %10 = vector.broadcast %9 : vector<1x256xf32> to vector<48x256xf32>
    %11 = arith.mulf %10, %5 : vector<48x256xf32>
    %12 = arith.addf %8, %11 : vector<48x256xf32>
    %c3 = arith.constant 3 : index
    %c0_5 = arith.constant 0 : index
    %13 = vector.load %arg2[%c3, %c0_5] : memref<8x256xf32, #tpu.memory_space<vmem>>, vector<1x256xf32>
    %14 = vector.broadcast %13 : vector<1x256xf32> to vector<48x256xf32>
    %15 = arith.addf %12, %14 : vector<48x256xf32>
    %cst = arith.constant 0.000000e+00 : f32
    %16 = vector.broadcast %cst : f32 to vector<48x256xf32>
    %17 = arith.maximumf %15, %16 : vector<48x256xf32>
    %c0_6 = arith.constant 0 : index
    %c0_7 = arith.constant 0 : index
    %18 = vector.load %arg3[%c0_6, %c0_7] : memref<48x1xf32, #tpu.memory_space<vmem>>, vector<48x1xf32>
    %19 = vector.broadcast %18 : vector<48x1xf32> to vector<48x256xf32>
    %20 = arith.mulf %17, %19 : vector<48x256xf32>
    %c0_8 = arith.constant 0 : index
    %c0_9 = arith.constant 0 : index
    %21 = vector.load %arg4[%c0_8, %c0_9] : memref<48x256xf32, #tpu.memory_space<vmem>>, vector<48x256xf32>
    tpu.vector_store %arg4[%c0_8, %c0_9], %20 {strides = array<i32>} : memref<48x256xf32, #tpu.memory_space<vmem>>, vector<48x256xf32>,
    return
  }
  func.func @transform_0(%arg0: i32) -> (i32, i32) {
    %c0_i32 = arith.constant 0 : i32
    %c0_i32_0 = arith.constant 0 : i32
    return %arg0, %c0_i32 : i32, i32
  }
  func.func @transform_1(%arg0: i32) -> (i32, i32) {
    %c0_i32 = arith.constant 0 : i32
    %c0_i32_0 = arith.constant 0 : i32
    %c0_i32_1 = arith.constant 0 : i32
    return %c0_i32, %c0_i32_0 : i32, i32
  }
  func.func @transform_2(%arg0: i32) -> (i32, i32) {
    %c0_i32 = arith.constant 0 : i32
    %c0_i32_0 = arith.constant 0 : i32
    %c0_i32_1 = arith.constant 0 : i32
    return %c0_i32, %c0_i32_0 : i32, i32
  }
  func.func @transform_3(%arg0: i32) -> (i32, i32) {
    %c0_i32 = arith.constant 0 : i32
    %c0_i32_0 = arith.constant 0 : i32
    return %arg0, %c0_i32 : i32, i32
  }
}

</mosaic_0001>

<bundles_post_ra>
// kernel: custom-call
= control target key start
LH: loop header
LB: loop body
LE: loop exit
PB: predicated region body
PF: predicated region fallthrough
CT: control target
= control target key end

     0   :  { %2 = vsyncpa [#allocation0], 0  ;;  %s61_s0 = inlined_call_operand.hbm [shape: c64[2,4,16,16], index: 0, kind: input, shape index: {}]   ;;  %s62_s1 = inlined_call_operand.vmem [shape: f32[2,4,16,16], index: 1, kind: output, shape index: {}]  }
   0x1   :  { %s3_s8 = sshll.u32 %s62_s1, 4  ;;  %s9_s11 = scalar_lea.hbm %s61_s0, 2048  ;;  %s4_s8 = int_to_ptr.vmem [resolvable:$true] %s3_s8 }
   0x2   :  { %p10_p0 = scmp.ne.s32.totalorder %s61_s0, %s9_s11  ;;  %s11_s16 = scalar_lea.hbm %s61_s0, 4096 }
   0x3   :  { %p12_p1 = scmp.lt.u32.totalorder %s11_s16, %s9_s11  ;;  %p13_p2 = scmp.lt.u32.totalorder %s9_s11, %s61_s0 }
   0x5   :  { %p14_p3 = por %p13_p2, %p12_p1 }
   0x7   :  { %p15_p4 = pnand %p14_p3, %p10_p0 }
   0x9   :  { %18 = shalt.err (!%p15_p4)  }
   0xa   :  { %s19_s1 = scalar_lea.vmem %s4_s8, 2048  ;;  %p24_p6 = scmp.lt.s32.totalorder %s4_s8, %s4_s8 }
   0xb   :  { %p20_p5 = scmp.ne.s32.totalorder %s4_s8, %s19_s1  ;;  %p25_p7 = scmp.lt.s32.totalorder %s19_s1, %s19_s1 }
   0xd   :  { %p26_p8 = por %p25_p7, %p24_p6 }
   0xf   :  { %p27_p9 = pnand %p26_p8, %p20_p5 }
  0x11   :  { %30 = shalt.err (!%p27_p9)  }
  0x12   :  { %6 = dma.hbm_to_vmem [thread:$0]  %s61_s0, 2048, %s4_s8, [#allocation0] }
  0x13   :  { %31 = dma.done.wait [#allocation0], 2048  }
  0x14   :  { %32 = vsyncadd [#allocation0], 4294965248 }
  0x15   :  { %8 = vsyncpa [#allocation0], 1 }

// kernel: custom-call.1
= control target key start
LH: loop header
LB: loop body
LE: loop exit
PB: predicated region body
PF: predicated region fallthrough
CT: control target
= control target key end

     0   :  { %s59_s0 = inlined_call_operand.hbm [shape: c64[2,4,16,16], index: 0, kind: input, shape index: {}]   ;;  %s60_s1 = inlined_call_operand.vmem [shape: f32[2,4,16,16], index: 1, kind: output, shape index: {}]  }
   0x1   :  { %s2_s8 = scalar_lea.hbm %s59_s0, 2048 }
   0x2   :  { %3 = vsyncpa [#allocation0], 0  ;;  %s4_s11 = sshll.u32 %s60_s1, 4  ;;  %s34_s14 = scalar_lea.hbm %s59_s0, 4096  ;;  %s5_s11 = int_to_ptr.vmem [resolvable:$true] %s4_s11 }
   0x3   :  { %p11_p0 = scmp.ne.s32.totalorder %s2_s8, %s34_s14  ;;  %p13_p1 = scmp.lt.u32.totalorder %s2_s8, %s59_s0 }
   0x4   :  { %p14_p2 = scmp.lt.u32.totalorder %s34_s14, %s34_s14  ;;  %p16_p4 = scmp.lt.u32.totalorder %s34_s14, %s2_s8 }
   0x6   :  { %p15_p3 = por %p14_p2, %p13_p1 }
   0x8   :  { %p17_p5 = por %p16_p4, %p15_p3 }
   0xa   :  { %p18_p6 = pnand %p17_p5, %p11_p0 }
   0xc   :  { %21 = shalt.err (!%p18_p6)  }
   0xd   :  { %s22_s17 = scalar_lea.vmem %s5_s11, 2048  ;;  %p27_p8 = scmp.lt.s32.totalorder %s5_s11, %s5_s11 }
   0xe   :  { %p23_p7 = scmp.ne.s32.totalorder %s5_s11, %s22_s17  ;;  %p28_p9 = scmp.lt.s32.totalorder %s22_s17, %s22_s17 }
  0x10   :  { %p29_p10 = por %p28_p9, %p27_p8 }
  0x12   :  { %p30_p11 = pnand %p29_p10, %p23_p7 }
  0x14   :  { %33 = shalt.err (!%p30_p11)  }
  0x15   :  { %7 = dma.hbm_to_vmem [thread:$0]  %s2_s8, 2048, %s5_s11, [#allocation0] }
  0x16   :  { %35 = dma.done.wait [#allocation0], 2048  }
  0x17   :  { %36 = vsyncadd [#allocation0], 4294965248 }
  0x18   :  { %9 = vsyncpa [#allocation0], 1 }

// kernel: double_conv_forward.3
= control target key start
LH: loop header
LB: loop body
LE: loop exit
PB: predicated region body
PF: predicated region fallthrough
CT: control target
= control target key end

     0   :  { %v982_v1 = vmov 0   ;;  %vm575_vm0 = vcmask 1046528   ;;  %vm383_vm1 = vcmask 1040384   ;;  %vm740_vm2 = vcmask 1041408   ;;  %s1309_s1 = inlined_call_operand.vmem [shape: bf16[3,128,256], index: 1, kind: input, shape index: {}]   ;;  %s1310_s2 = inlined_call_operand.vmem [shape: f32[8,128], index: 2, kind: input, shape index: {}]   ;;  %s1311_s0 = inlined_call_operand.vmem [shape: f32[48,128], index: 0, kind: input, shape index: {}]   ;;  %s1312_s3 = inlined_call_operand.vmem [shape: f32[48,1], index: 3, kind: input, shape index: {}]   ;;  %s1313_s4 = inlined_call_operand.vmem [shape: bf16[48,256], index: 4, kind: output, shape index: {0}]   ;;  %s1314_s5 = inlined_call_operand.vmem [shape: f32[1,8,128], index: 5, kind: output, shape index: {1}]  }
   0x1   :  { %v910_v0 = vld [vmem:[%s1309_s1 + $0x4] ss:$8 sps:$4 sm:$0xff]   ;;  %163 = vmatprep.mubr.bf16.mxu0 %v982_v1  ;;  %340 = vmatprep.mubr.bf16.mxu1 %v982_v1  ;;  %v914_v3 = vld [vmem:[%s1309_s1] ss:$8 sps:$4 sm:$0xff]   ;;  %v916_v5 = vld [vmem:[%s1309_s1 + $0x14] ss:$8 sps:$4 sm:$0xff]  }
   0x2   :  { %v912_v2 = vld [vmem:[%s1309_s1 + $0x104] ss:$8 sps:$4 sm:$0xff]   ;;  %908 = vset.pattern.permute.xlu0 %v982_v1  ;;  %909 = vset.pattern.permute.xlu1 %v982_v1  ;;  %v915_v4 = vld [vmem:[%s1309_s1 + $0x100] ss:$8 sps:$4 sm:$0xff]   ;;  %v918_v6 = vld [vmem:[%s1309_s1 + $0x114] ss:$8 sps:$4 sm:$0xff]  }
   0x3   :  { %131 = vmatprep.subr.bf16.mxu0 %v910_v0  ;;  %308 = vmatprep.subr.bf16.mxu1 %v912_v2  ;;  %v920_v7 = vld [vmem:[%s1309_s1 + $0x10] ss:$8 sps:$4 sm:$0xff]   ;;  %v922_v9 = vld [vmem:[%s1309_s1 + $0x24] ss:$8 sps:$4 sm:$0xff]   ;;  %v926_v11 = vld [vmem:[%s1309_s1 + $0x20] ss:$8 sps:$4 sm:$0xff]  }
   0x4   :  { %132 = vmatpush1.bf16.msra.mxu0 %v914_v3  ;;  %309 = vmatpush1.bf16.msra.mxu1 %v915_v4  ;;  %v921_v8 = vld [vmem:[%s1309_s1 + $0x110] ss:$8 sps:$4 sm:$0xff]   ;;  %v924_v10 = vld [vmem:[%s1309_s1 + $0x124] ss:$8 sps:$4 sm:$0xff]   ;;  %v927_v12 = vld [vmem:[%s1309_s1 + $0x120] ss:$8 sps:$4 sm:$0xff]  }
   0x5   :  { %133 = vmatprep.subr.bf16.mxu0 %v916_v5  ;;  %310 = vmatprep.subr.bf16.mxu1 %v918_v6  ;;  %v928_v13 = vld [vmem:[%s1309_s1 + $0x34] ss:$8 sps:$4 sm:$0xff]   ;;  %v932_v15 = vld [vmem:[%s1309_s1 + $0x30] ss:$8 sps:$4 sm:$0xff]   ;;  %v934_v17 = vld [vmem:[%s1309_s1 + $0x44] ss:$8 sps:$4 sm:$0xff]  }
   0x6   :  { %v930_v14 = vld [vmem:[%s1309_s1 + $0x134] ss:$8 sps:$4 sm:$0xff]   ;;  %v933_v16 = vld [vmem:[%s1309_s1 + $0x130] ss:$8 sps:$4 sm:$0xff]   ;;  %v936_v18 = vld [vmem:[%s1309_s1 + $0x144] ss:$8 sps:$4 sm:$0xff]  }
   0x7   :  { %v938_v19 = vld [vmem:[%s1309_s1 + $0x40] ss:$8 sps:$4 sm:$0xff]   ;;  %v940_v21 = vld [vmem:[%s1309_s1 + $0x54] ss:$8 sps:$4 sm:$0xff]   ;;  %v944_v23 = vld [vmem:[%s1309_s1 + $0x50] ss:$8 sps:$4 sm:$0xff]  }
   0x8   :  { %134 = vmatpush1.bf16.msra.mxu0 %v920_v7  ;;  %311 = vmatpush1.bf16.msra.mxu1 %v921_v8  ;;  %v939_v20 = vld [vmem:[%s1309_s1 + $0x140] ss:$8 sps:$4 sm:$0xff]   ;;  %v942_v22 = vld [vmem:[%s1309_s1 + $0x154] ss:$8 sps:$4 sm:$0xff]   ;;  %v945_v24 = vld [vmem:[%s1309_s1 + $0x150] ss:$8 sps:$4 sm:$0xff]  }
   0x9   :  { %135 = vmatprep.subr.bf16.mxu0 %v922_v9  ;;  %312 = vmatprep.subr.bf16.mxu1 %v924_v10  ;;  %v946_v25 = vld [vmem:[%s1309_s1 + $0x64] ss:$8 sps:$4 sm:$0xff]   ;;  %v950_v27 = vld [vmem:[%s1309_s1 + $0x60] ss:$8 sps:$4 sm:$0xff]   ;;  %v952_v29 = vld [vmem:[%s1309_s1 + $0x74] ss:$8 sps:$4 sm:$0xff]  }
   0xa   :  { %v948_v26 = vld [vmem:[%s1309_s1 + $0x164] ss:$8 sps:$4 sm:$0xff]   ;;  %v951_v28 = vld [vmem:[%s1309_s1 + $0x160] ss:$8 sps:$4 sm:$0xff]   ;;  %v954_v30 = vld [vmem:[%s1309_s1 + $0x174] ss:$8 sps:$4 sm:$0xff]  }
   0xb   :  { %v956_v31 = vld [vmem:[%s1309_s1 + $0x70] ss:$8 sps:$4 sm:$0xff]   ;;  %v26_v33 = vld [vmem:[%s1311_s0] sm:$0xff]  ;;  %v27_v34 = vld [vmem:[%s1311_s0 + $0x8] sm:$0xff]  ;;  %vm742_vm3 = vcmask 1042432   ;;  %vm744_vm4 = vcmask 1043456  }
   0xc   :  { %136 = vmatpush1.bf16.msra.mxu0 %v926_v11  ;;  %313 = vmatpush1.bf16.msra.mxu1 %v927_v12  ;;  %v957_v32 = vld [vmem:[%s1309_s1 + $0x170] ss:$8 sps:$4 sm:$0xff]   ;;  %v960_v35 = vld [vmem:[%s1309_s1 + $0x84] ss:$8 sps:$4 sm:$0xff]   ;;  %v1122_v36 = vpack.c.bf16 %v27_v34, %v26_v33  ;;  %v958_v37 = vld [vmem:[%s1309_s1 + $0x80] ss:$8 sps:$4 sm:$0xff]  }
   0xd   :  { %137 = vmatprep.subr.bf16.mxu0 %v928_v13  ;;  %314 = vmatprep.subr.bf16.mxu1 %v930_v14  ;;  %v963_v38 = vld [vmem:[%s1309_s1 + $0x94] ss:$8 sps:$4 sm:$0xff]   ;;  %v961_v39 = vld [vmem:[%s1309_s1 + $0x90] ss:$8 sps:$4 sm:$0xff]   ;;  %v20_v42 = vld [vmem:[%s1312_s3] sm:$0xff]  ;;  %vm746_vm5 = vcmask 1044480  }
   0xe   :  { %v28_v40 = vld [vmem:[%s1311_s0 + $0x10] sm:$0xff]  ;;  %v29_v41 = vld [vmem:[%s1311_s0 + $0x18] sm:$0xff]  ;;  %v966_v44 = vld [vmem:[%s1309_s1 + $0xa4] ss:$8 sps:$4 sm:$0xff]   ;;  %626 = vperm.xlu0 %908, %v20_v42  }
   0xf   :  { %v22_v43 = vld [vmem:[%s1312_s3 + $0x10] sm:$0xff]  ;;  %v33_v45 = vpack.c.bf16 %v29_v41, %v28_v40  ;;  %v964_v46 = vld [vmem:[%s1309_s1 + $0xa0] ss:$8 sps:$4 sm:$0xff]   ;;  %v23_v52 = vld [vmem:[%s1312_s3 + $0x18] sm:$0xff] }
  0x10   :  { %138 = vmatpush1.bf16.msra.mxu0 %v932_v15  ;;  %315 = vmatpush1.bf16.msra.mxu1 %v933_v16  ;;  %v969_v47 = vld [vmem:[%s1309_s1 + $0xb4] ss:$8 sps:$4 sm:$0xff]   ;;  %v967_v48 = vld [vmem:[%s1309_s1 + $0xb0] ss:$8 sps:$4 sm:$0xff]   ;;  %v30_v49 = vld [vmem:[%s1311_s0 + $0x20] sm:$0xff] }
  0x11   :  { %139 = vmatprep.subr.bf16.mxu0 %v934_v17  ;;  %316 = vmatprep.subr.bf16.mxu1 %v936_v18  ;;  %v31_v50 = vld [vmem:[%s1311_s0 + $0x28] sm:$0xff]  ;;  %v975_v56 = vld [vmem:[%s1309_s1 + $0xd4] ss:$8 sps:$4 sm:$0xff]   ;;  %v973_v57 = vld [vmem:[%s1309_s1 + $0xd0] ss:$8 sps:$4 sm:$0xff]  }
  0x12   :  { %636 = vperm.xlu1 %909, %v22_v43   ;;  %v21_v51 = vld [vmem:[%s1312_s3 + $0x8] sm:$0xff]  ;;  %v34_v54 = vpack.c.bf16 %v31_v50, %v30_v49  ;;  %v24_v58 = vld [vmem:[%s1312_s3 + $0x20] sm:$0xff]  ;;  %v981_v62 = vld [vmem:[%s1309_s1 + $0xf4] ss:$8 sps:$4 sm:$0xff]  }
  0x13   :  { %v972_v53 = vld [vmem:[%s1309_s1 + $0xc4] ss:$8 sps:$4 sm:$0xff]   ;;  %631 = vperm.xlu0 %908, %v21_v51   ;;  %v970_v55 = vld [vmem:[%s1309_s1 + $0xc0] ss:$8 sps:$4 sm:$0xff]   ;;  %v979_v63 = vld [vmem:[%s1309_s1 + $0xf0] ss:$8 sps:$4 sm:$0xff]  }
  0x14   :  { %140 = vmatpush1.bf16.msra.mxu0 %v938_v19  ;;  %317 = vmatpush1.bf16.msra.mxu1 %v939_v20  ;;  %v25_v59 = vld [vmem:[%s1312_s3 + $0x28] sm:$0xff] }
  0x15   :  { %141 = vmatprep.subr.bf16.mxu0 %v940_v21  ;;  %318 = vmatprep.subr.bf16.mxu1 %v942_v22  ;;  %v978_v60 = vld [vmem:[%s1309_s1 + $0xe4] ss:$8 sps:$4 sm:$0xff]   ;;  %v976_v61 = vld [vmem:[%s1309_s1 + $0xe0] ss:$8 sps:$4 sm:$0xff]  }
  0x16   :  { %641 = vperm.xlu1 %909, %v23_v52  }
  0x17   :  { %646 = vperm.xlu0 %908, %v24_v58  }
  0x18   :  { %142 = vmatpush1.bf16.msra.mxu0 %v944_v23  ;;  %319 = vmatpush1.bf16.msra.mxu1 %v945_v24 }
  0x19   :  { %143 = vmatprep.subr.bf16.mxu0 %v946_v25  ;;  %320 = vmatprep.subr.bf16.mxu1 %v948_v26 }
  0x1a   :  { %651 = vperm.xlu1 %909, %v25_v59  }
  0x1c   :  { %144 = vmatpush1.bf16.msra.mxu0 %v950_v27  ;;  %321 = vmatpush1.bf16.msra.mxu1 %v951_v28 }
  0x1d   :  { %145 = vmatprep.subr.bf16.mxu0 %v952_v29  ;;  %322 = vmatprep.subr.bf16.mxu1 %v954_v30 }
  0x20   :  { %146 = vmatpush1.bf16.msra.mxu0 %v956_v31  ;;  %323 = vmatpush1.bf16.msra.mxu1 %v957_v32 }
  0x21   :  { %500 = vmatprep.subr.bf16.mxu0 %v960_v35  ;;  %891 = vmatprep.subr.bf16.mxu1 %v960_v35 }
  0x23   :  { %164 = vmatmul.mubr.bf16.vlgmr.msra.gmra.mrb[0].mxu0 %v1122_v36  ;;  %341 = vmatmul.mubr.bf16.vlgmr.msra.gmra.mrb[0].mxu1 %v1122_v36 }
  0x24   :  { %501 = vmatpush1.bf16.msra.mxu0 %v958_v37  ;;  %899 = vmatpush1.bf16.msra.mxu1 %v958_v37 }
  0x25   :  { %502 = vmatprep.subr.bf16.mxu0 %v963_v38  ;;  %892 = vmatprep.subr.bf16.mxu1 %v963_v38 }
  0x26   :  { %173 = vmatprep.mubr.bf16.mxu0 %v982_v1  ;;  %350 = vmatprep.mubr.bf16.mxu1 %v982_v1 }
  0x28   :  { %503 = vmatpush1.bf16.msra.mxu0 %v961_v39  ;;  %900 = vmatpush1.bf16.msra.mxu1 %v961_v39 }
  0x29   :  { %504 = vmatprep.subr.bf16.mxu0 %v966_v44  ;;  %893 = vmatprep.subr.bf16.mxu1 %v966_v44 }
  0x2b   :  { %174 = vmatmul.mubr.bf16.gmra.mrb[4].mxu0 %v33_v45  ;;  %351 = vmatmul.mubr.bf16.gmra.mrb[4].mxu1 %v33_v45 }
  0x2c   :  { %505 = vmatpush1.bf16.msra.mxu0 %v964_v46  ;;  %901 = vmatpush1.bf16.msra.mxu1 %v964_v46 }
  0x2d   :  { %506 = vmatprep.subr.bf16.mxu0 %v969_v47  ;;  %894 = vmatprep.subr.bf16.mxu1 %v969_v47 }
  0x2e   :  { %183 = vmatprep.mubr.bf16.mxu0 %v982_v1  ;;  %360 = vmatprep.mubr.bf16.mxu1 %v982_v1 }
  0x30   :  { %507 = vmatpush1.bf16.msra.mxu0 %v967_v48  ;;  %902 = vmatpush1.bf16.msra.mxu1 %v967_v48 }
  0x31   :  { %508 = vmatprep.subr.bf16.mxu0 %v972_v53  ;;  %895 = vmatprep.subr.bf16.mxu1 %v972_v53 }
  0x33   :  { %184 = vmatmul.mubr.bf16.gmra.mrb[8].mxu0 %v34_v54  ;;  %361 = vmatmul.mubr.bf16.gmra.mrb[8].mxu1 %v34_v54 }
  0x34   :  { %509 = vmatpush1.bf16.msra.mxu0 %v970_v55  ;;  %903 = vmatpush1.bf16.msra.mxu1 %v970_v55 }
  0x35   :  { %510 = vmatprep.subr.bf16.mxu0 %v975_v56  ;;  %896 = vmatprep.subr.bf16.mxu1 %v975_v56 }
  0x36   :  { %532 = vmatprep.mubr.bf16.mxu0 %v982_v1  ;;  %542 = vmatprep.mubr.bf16.mxu1 %v982_v1 }
  0x38   :  { %511 = vmatpush1.bf16.msra.mxu0 %v973_v57  ;;  %904 = vmatpush1.bf16.msra.mxu1 %v973_v57 }
  0x39   :  { %512 = vmatprep.subr.bf16.mxu0 %v978_v60  ;;  %897 = vmatprep.subr.bf16.mxu1 %v978_v60 }
  0x3c   :  { %513 = vmatpush1.bf16.msra.mxu0 %v976_v61  ;;  %905 = vmatpush1.bf16.msra.mxu1 %v976_v61 }
  0x3d   :  { %514 = vmatprep.subr.bf16.mxu0 %v981_v62  ;;  %898 = vmatprep.subr.bf16.mxu1 %v981_v62 }
  0x40   :  { %515 = vmatpush1.bf16.msra.mxu0 %v979_v63  ;;  %906 = vmatpush1.bf16.msra.mxu1 %v979_v63 }
  0x43   :  { %533 = vmatmul.mubr.bf16.vlgmr.msra.gmra.mrb[12].mxu0 %v1122_v36  ;;  %543 = vmatmul.mubr.bf16.vlgmr.msra.gmra.mrb[12].mxu1 %v33_v45 }
  0x44   :  { %552 = vmatprep.mubr.bf16.mxu1 %v982_v1 }
  0x4b   :  { %553 = vmatmul.mubr.bf16.gmra.mrb[16].mxu1 %v34_v54 }
  0xf6   :  { %v1209_v0 = vpop.f32.mrb[0].mxu0  ;;  %v342_v2 = vpop.f32.mrb[0].mxu1 }
  0xf7   :  { %v384_v3 = vrot.slane %v1209_v0, 7  ;;  %v576_v4 = vrot.slane %v342_v2, 1  ;;  %v1212_v5 = vpop.f32.mrb[1].mxu0  ;;  %v344_v6 = vpop.f32.mrb[1].mxu1 }
  0xf8   :  { %v169_v7 = vpop.f32.mrb[2].mxu0  ;;  %v346_v8 = vpop.f32.mrb[2].mxu1  ;;  %v385_v1 = vrot.slane %v1212_v5, 7  ;;  %v579_v13 = vrot.slane %v344_v6, 1 }
  0xf9   :  { %v386_v9 = vrot.slane %v169_v7, 7  ;;  %v577_v10 = vrot.slane %v346_v8, 1  ;;  %v171_v11 = vpop.f32.mrb[3].mxu0  ;;  %v348_v12 = vpop.f32.mrb[3].mxu1 }
  0xfa   :  { %v388_v14 = vrot.slane %v171_v11, 7  ;;  %v580_v15 = vrot.slane %v348_v12, 1  ;;  %v627_v8 = vpop.permute.xlu0 %626 }
  0xfb   :  { %v1216_v16 = vsel %vm575_vm0, %v576_v4, %v577_v10  ;;  %v1221_v17 = vsel %vm383_vm1, %v384_v3, %v386_v9 }
  0xfc   :  { %v1224_v18 = vsel %vm575_vm0, %v579_v13, %v580_v15  ;;  %v1229_v19 = vsel %vm383_vm1, %v385_v1, %v388_v14 }
  0xfe   :  { %v175_v20 = vpop.f32.mrb[4].mxu0  ;;  %v352_v21 = vpop.f32.mrb[4].mxu1 }
  0xff   :  { %v390_v22 = vrot.slane %v175_v20, 7  ;;  %v582_v23 = vrot.slane %v352_v21, 1  ;;  %v177_v24 = vpop.f32.mrb[5].mxu0  ;;  %v354_v25 = vpop.f32.mrb[5].mxu1 }
 0x100   :  { %v392_v26 = vrot.slane %v177_v24, 7  ;;  %v584_v27 = vrot.slane %v354_v25, 1  ;;  %v179_v28 = vpop.f32.mrb[6].mxu0  ;;  %v356_v29 = vpop.f32.mrb[6].mxu1 }
 0x101   :  { %v394_v30 = vrot.slane %v179_v28, 7  ;;  %v586_v31 = vrot.slane %v356_v29, 1  ;;  %v181_v32 = vpop.f32.mrb[7].mxu0  ;;  %v358_v33 = vpop.f32.mrb[7].mxu1  ;;  %v391_v34 = vsel %vm383_vm1, %v386_v9, %v390_v22  ;;  %v583_v35 = vsel %vm575_vm0, %v577_v10, %v582_v23 }
 0x102   :  { %v396_v36 = vrot.slane %v181_v32, 7  ;;  %v588_v37 = vrot.slane %v358_v33, 1  ;;  %v393_v38 = vsel %vm383_vm1, %v388_v14, %v392_v26  ;;  %v585_v39 = vsel %vm575_vm0, %v580_v15, %v584_v27  ;;  %v637_v9 = vpop.permute.xlu1 %636 }
 0x103   :  { %v587_v40 = vsel %vm575_vm0, %v582_v23, %v586_v31  ;;  %v395_v41 = vsel %vm383_vm1, %v390_v22, %v394_v30  ;;  %v418_v10 = vsel %vm383_vm1, 0.0, %v384_v3  ;;  %v419_v15 = vsel %vm383_vm1, 0.0, %v385_v1 }
 0x104   :  { %v589_v42 = vsel %vm575_vm0, %v584_v27, %v588_v37  ;;  %v397_v43 = vsel %vm383_vm1, %v392_v26, %v396_v36 }
 0x106   :  { %v185_v44 = vpop.f32.mrb[8].mxu0  ;;  %v362_v45 = vpop.f32.mrb[8].mxu1 }
 0x107   :  { %v398_v46 = vrot.slane %v185_v44, 7  ;;  %v590_v47 = vrot.slane %v362_v45, 1  ;;  %v187_v48 = vpop.f32.mrb[9].mxu0  ;;  %v364_v49 = vpop.f32.mrb[9].mxu1 }
 0x108   :  { %v400_v50 = vrot.slane %v187_v48, 7  ;;  %v592_v51 = vrot.slane %v364_v49, 1  ;;  %v189_v52 = vpop.f32.mrb[10].mxu0  ;;  %v366_v53 = vpop.f32.mrb[10].mxu1 }
 0x109   :  { %v402_v54 = vrot.slane %v189_v52, 7  ;;  %v594_v55 = vrot.slane %v366_v53, 1  ;;  %v191_v56 = vpop.f32.mrb[11].mxu0  ;;  %v1239_v57 = vpop.f32.mrb[11].mxu1  ;;  %v591_v58 = vsel %vm575_vm0, %v586_v31, %v590_v47  ;;  %v1243_v59 = vsel %vm383_vm1, %v394_v30, %v398_v46 }
 0x10a   :  { %v404_v60 = vrot.slane %v191_v56, 7  ;;  %v596_v61 = vrot.slane %v1239_v57, 1  ;;  %v593_v62 = vsel %vm575_vm0, %v588_v37, %v592_v51  ;;  %v1248_v63 = vsel %vm383_vm1, %v396_v36, %v400_v50 }
 0x10b   :  { %v1251_v2 = vsel %vm575_vm0, %v590_v47, %v594_v55  ;;  %v1254_v4 = vsel %vm383_vm1, %v398_v46, %v402_v54  ;;  %v1271_v22 = vsel %vm575_vm0, %v594_v55, 0.0 }
 0x10c   :  { %v1259_v6 = vsel %vm575_vm0, %v592_v51, %v596_v61  ;;  %v1262_v7 = vsel %vm383_vm1, %v400_v50, %v404_v60 }
 0x116   :  { %v534_v11 = vpop.f32.mrb[12].mxu0  ;;  %v544_v12 = vpop.f32.mrb[12].mxu1 }
 0x117   :  { %v535_v13 = vadd.f32 %v534_v11, %v418_v10  ;;  %v545_v14 = vadd.f32 %v544_v12, %v391_v34  ;;  %v536_v20 = vpop.f32.mrb[13].mxu0  ;;  %v546_v21 = vpop.f32.mrb[13].mxu1 }
 0x118   :  { %v537_v23 = vadd.f32 %v536_v20, %v419_v15  ;;  %v547_v24 = vadd.f32 %v546_v21, %v393_v38  ;;  %v538_v25 = vpop.f32.mrb[14].mxu0  ;;  %v548_v26 = vpop.f32.mrb[14].mxu1 }
 0x119   :  { %v612_v0 = vadd.f32 %v1216_v16, %v535_v13  ;;  %v616_v3 = vadd.f32 %v587_v40, %v545_v14  ;;  %v539_v27 = vadd.f32 %v538_v25, %v1221_v17  ;;  %v549_v28 = vadd.f32 %v548_v26, %v395_v41  ;;  %v540_v29 = vpop.f32.mrb[15].mxu0  ;;  %v550_v30 = vpop.f32.mrb[15].mxu1 }
 0x11a   :  { %v613_v5 = vadd.f32 %v1224_v18, %v537_v23  ;;  %v617_v1 = vadd.f32 %v589_v42, %v547_v24  ;;  %v541_v31 = vadd.f32 %v540_v29, %v1229_v19  ;;  %v551_v32 = vadd.f32 %v550_v30, %v397_v43  ;;  %v632_v38 = vpop.permute.xlu0 %631  ;;  %v642_v16 = vpop.permute.xlu1 %641 }
 0x11b   :  { %v654_v33 = vmul.f32 %v627_v8, %v612_v0  ;;  %v658_v34 = vmul.f32 %v637_v9, %v616_v3  ;;  %v614_v36 = vadd.f32 %v583_v35, %v539_v27  ;;  %v618_v37 = vadd.f32 %v591_v58, %v549_v28 }
 0x11c   :  { %v655_v44 = vmul.f32 %v627_v8, %v613_v5  ;;  %v659_v45 = vmul.f32 %v637_v9, %v617_v1  ;;  %v615_v40 = vadd.f32 %v585_v39, %v541_v31  ;;  %v619_v46 = vadd.f32 %v593_v62, %v551_v32 }
 0x11d   :  { %v688_v17 = vmul.f32 %v654_v33, %v654_v33  ;;  %v690_v41 = vmul.f32 %v658_v34, %v658_v34  ;;  %v656_v47 = vmul.f32 %v632_v38, %v614_v36  ;;  %v660_v48 = vmul.f32 %v642_v16, %v618_v37 }
 0x11e   :  { %v705_v49 = vmul.f32 %v655_v44, %v655_v44  ;;  %v722_v18 = vmul.f32 %v655_v44, %v654_v33  ;;  %v885_v42 = vpack.c.bf16 %v655_v44, %v654_v33  ;;  %v707_v50 = vmul.f32 %v659_v45, %v659_v45  ;;  %v554_v19 = vpop.f32.mrb[16].mxu1  ;;  %v647_v27 = vpop.permute.xlu0 %646 }
 0x11f   :  { %v724_v43 = vmul.f32 %v659_v45, %v658_v34  ;;  %v887_v51 = vpack.c.bf16 %v659_v45, %v658_v34  ;;  %v666_v52 = vadd.f32 %v656_v47, %v654_v33  ;;  %v689_v35 = vmul.f32 %v656_v47, %v656_v47  ;;  %v556_v53 = vpop.f32.mrb[17].mxu1  ;;  %v652_v5 = vpop.permute.xlu1 %651 }
 0x120   :  { %785 = vst [vmem:[%s1313_s4] sm:$0xff] %v885_v42  ;;  %v691_v39 = vmul.f32 %v660_v48, %v660_v48  ;;  %v657_v54 = vmul.f32 %v632_v38, %v615_v40  ;;  %v661_v55 = vmul.f32 %v642_v16, %v619_v46  ;;  %v555_v56 = vadd.f32 %v554_v19, %v1243_v59  ;;  %v558_v58 = vpop.f32.mrb[18].mxu1 }
 0x121   :  { %787 = vst [vmem:[%s1313_s4 + $0x10] sm:$0xff] %v887_v51  ;;  %v694_v60 = vadd.f32 %v689_v35, %v688_v17  ;;  %v667_v62 = vadd.f32 %v666_v52, %v658_v34  ;;  %v557_v8 = vadd.f32 %v556_v53, %v1248_v63  ;;  %v559_v9 = vadd.f32 %v558_v58, %v1254_v4  ;;  %v560_v10 = vpop.f32.mrb[19].mxu1 }
 0x122   :  { %v677_v11 = vadd.f32 %v657_v54, %v655_v44  ;;  %v706_v12 = vmul.f32 %v657_v54, %v657_v54  ;;  %v723_v13 = vmul.f32 %v657_v54, %v656_v47  ;;  %v886_v14 = vpack.c.bf16 %v657_v54, %v656_v47 }
 0x123   :  { %v668_v15 = vadd.f32 %v667_v62, %v660_v48  ;;  %v695_v20 = vadd.f32 %v694_v60, %v690_v41  ;;  %v708_v21 = vmul.f32 %v661_v55, %v661_v55  ;;  %v725_v59 = vmul.f32 %v661_v55, %v660_v48 }
 0x124   :  { %v711_v23 = vadd.f32 %v706_v12, %v705_v49  ;;  %v728_v24 = vadd.f32 %v723_v13, %v722_v18  ;;  %786 = vst [vmem:[%s1313_s4 + $0x8] sm:$0xff] %v886_v14  ;;  %v678_v25 = vadd.f32 %v677_v11, %v659_v45  ;;  %v888_v26 = vpack.c.bf16 %v661_v55, %v660_v48 }
 0x125   :  { %v696_v63 = vadd.f32 %v695_v20, %v691_v39  ;;  %v620_v4 = vadd.f32 %v1251_v2, %v555_v56  ;;  %v621_v0 = vadd.f32 %v1259_v6, %v557_v8  ;;  %v622_v3 = vadd.f32 %v1271_v22, %v559_v9 }
 0x126   :  { %v679_v28 = vadd.f32 %v678_v25, %v661_v55  ;;  %v712_v29 = vadd.f32 %v711_v23, %v707_v50  ;;  %v729_v30 = vadd.f32 %v728_v24, %v724_v43  ;;  %788 = vst [vmem:[%s1313_s4 + $0x18] sm:$0xff] %v888_v26  ;;  %v561_v1 = vadd.f32 %v560_v10, %v1262_v7 }
 0x127   :  { %v611_v31 = vsel %vm575_vm0, %v596_v61, 0.0  ;;  %v662_v2 = vmul.f32 %v647_v27, %v620_v4  ;;  %v663_v32 = vmul.f32 %v647_v27, %v621_v0  ;;  %v664_v6 = vmul.f32 %v652_v5, %v622_v3 }
 0x128   :  { %v713_v33 = vadd.f32 %v712_v29, %v708_v21  ;;  %v730_v22 = vadd.f32 %v729_v30, %v725_v59  ;;  %v623_v34 = vadd.f32 %v611_v31, %v561_v1 }
 0x129   :  { %v669_v36 = vadd.f32 %v668_v15, %v662_v2  ;;  %v692_v37 = vmul.f32 %v662_v2, %v662_v2  ;;  %v680_v38 = vadd.f32 %v679_v28, %v663_v32  ;;  %v709_v44 = vmul.f32 %v663_v32, %v663_v32 }
 0x12a   :  { %v726_v45 = vmul.f32 %v663_v32, %v662_v2  ;;  %v889_v16 = vpack.c.bf16 %v663_v32, %v662_v2  ;;  %v693_v40 = vmul.f32 %v664_v6, %v664_v6  ;;  %v665_v46 = vmul.f32 %v652_v5, %v623_v34 }
 0x12b   :  { %v697_v17 = vadd.f32 %v696_v63, %v692_v37  ;;  %v714_v7 = vadd.f32 %v713_v33, %v709_v44  ;;  %v670_v41 = vadd.f32 %v669_v36, %v664_v6 }
 0x12c   :  { %v731_v57 = vadd.f32 %v730_v22, %v726_v45  ;;  %789 = vst [vmem:[%s1313_s4 + $0x20] sm:$0xff] %v889_v16  ;;  %v681_v61 = vadd.f32 %v680_v38, %v665_v46  ;;  %v710_v47 = vmul.f32 %v665_v46, %v665_v46  ;;  %v727_v48 = vmul.f32 %v665_v46, %v664_v6 }
 0x12d   :  { %v671_v49 = vrot.slane %v670_v41, 4  ;;  %v698_v18 = vadd.f32 %v697_v17, %v693_v40  ;;  %v890_v42 = vpack.c.bf16 %v665_v46, %v664_v6 }
 0x12e   :  { %v682_v50 = vrot.slane %v681_v61, 4  ;;  %v715_v19 = vadd.f32 %v714_v7, %v710_v47  ;;  %v732_v43 = vadd.f32 %v731_v57, %v727_v48 }
 0x12f   :  { %v672_v51 = vadd.f32 %v671_v49, %v670_v41  ;;  %v699_v52 = vrot.slane %v698_v18, 4  ;;  %790 = vst [vmem:[%s1313_s4 + $0x28] sm:$0xff] %v890_v42 }
 0x130   :  { %v683_v35 = vadd.f32 %v682_v50, %v681_v61  ;;  %v716_v53 = vrot.slane %v715_v19, 4  ;;  %v733_v39 = vrot.slane %v732_v43, 4 }
 0x131   :  { %v673_v54 = vrot.slane %v672_v51, 2  ;;  %v700_v55 = vadd.f32 %v699_v52, %v698_v18 }
 0x132   :  { %v684_v56 = vrot.slane %v683_v35, 2  ;;  %v717_v58 = vadd.f32 %v716_v53, %v715_v19  ;;  %v734_v60 = vadd.f32 %v733_v39, %v732_v43 }
 0x133   :  { %v674_v62 = vadd.f32 %v673_v54, %v672_v51  ;;  %v701_v8 = vrot.slane %v700_v55, 2 }
 0x134   :  { %v685_v9 = vadd.f32 %v684_v56, %v683_v35  ;;  %v718_v10 = vrot.slane %v717_v58, 2  ;;  %v735_v11 = vrot.slane %v734_v60, 2 }
 0x135   :  { %v675_v12 = vrot.slane %v674_v62, 1  ;;  %v702_v13 = vadd.f32 %v701_v8, %v700_v55 }
 0x136   :  { %v686_v14 = vrot.slane %v685_v9, 1  ;;  %v719_v15 = vadd.f32 %v718_v10, %v717_v58  ;;  %v736_v20 = vadd.f32 %v735_v11, %v734_v60 }
 0x137   :  { %v676_v21 = vadd.f32 %v675_v12, %v674_v62  ;;  %v703_v59 = vrot.slane %v702_v13, 1 }
 0x138   :  { %v687_v23 = vadd.f32 %v686_v14, %v685_v9  ;;  %v720_v24 = vrot.slane %v719_v15, 1  ;;  %v737_v25 = vrot.slane %v736_v20, 1 }
 0x139   :  { %v704_v26 = vadd.f32 %v703_v59, %v702_v13 }
 0x13a   :  { %v721_v63 = vadd.f32 %v720_v24, %v719_v15  ;;  %v738_v4 = vadd.f32 %v737_v25, %v736_v20  ;;  %v739_v0 = vsel %vm383_vm1, %v676_v21, %v687_v23 }
 0x13b   :  { %v741_v3 = vsel %vm740_vm2, %v739_v0, %v704_v26 }
 0x13c   :  { %v743_v27 = vsel %vm742_vm3, %v741_v3, %v721_v63 }
 0x13d   :  { %v745_v28 = vsel %vm744_vm4, %v743_v27, %v738_v4 }
 0x13e   :  { %v747_v29 = vsel %vm746_vm5, %v745_v28, 0.0 }
 0x13f   :  { %748 = vst [vmem:[%s1314_s5] sm:$0xff] %v747_v29 }

// kernel: double_conv_forward.4
= control target key start
LH: loop header
LB: loop body
LE: loop exit
PB: predicated region body
PF: predicated region fallthrough
CT: control target
= control target key end

     0   :  { %v1590_v0 = vmov 0   ;;  %vm1042_vm0 = vcmask 1046528   ;;  %vm770_vm1 = vcmask 1040384   ;;  %vm1177_vm2 = vcmask 1041408   ;;  %s2124_s3 = inlined_call_operand.vmem [shape: f32[48,1], index: 3, kind: input, shape index: {}]   ;;  %s2125_s1 = inlined_call_operand.vmem [shape: bf16[3,256,256], index: 1, kind: input, shape index: {}]   ;;  %s2126_s0 = inlined_call_operand.vmem [shape: bf16[48,256], index: 0, kind: input, shape index: {}]   ;;  %s2127_s2 = inlined_call_operand.vmem [shape: f32[8,256], index: 2, kind: input, shape index: {}]   ;;  %s2128_s4 = inlined_call_operand.vmem [shape: bf16[48,256], index: 4, kind: output, shape index: {0}]   ;;  %s2129_s5 = inlined_call_operand.vmem [shape: f32[1,8,128], index: 5, kind: output, shape index: {1}]  }
   0x1   :  { %1445 = vset.pattern.permute.xlu1 %v1590_v0  ;;  %1444 = vset.pattern.permute.xlu0 %v1590_v0  ;;  %v21_v1 = vld [vmem:[%s2124_s3 + $0x10] sm:$0xff]  ;;  %v19_v2 = vld [vmem:[%s2124_s3] sm:$0xff]  ;;  %v22_v3 = vld [vmem:[%s2124_s3 + $0x18] sm:$0xff]  ;;  %vm1179_vm3 = vcmask 1042432   ;;  %vm1181_vm4 = vcmask 1043456   ;;  %vm1183_vm5 = vcmask 1044480  }
   0x2   :  { %178 = vperm.xlu1 %1445, %v21_v1   ;;  %168 = vperm.xlu0 %1444, %v19_v2   ;;  %v20_v4 = vld [vmem:[%s2124_s3 + $0x8] sm:$0xff]  ;;  %v23_v8 = vld [vmem:[%s2124_s3 + $0x20] sm:$0xff]  ;;  %v1452_v11 = vld [vmem:[%s2125_s1 + $0x14] ss:$8 sps:$4 sm:$0xff]  }
   0x3   :  { %v1446_v5 = vld [vmem:[%s2125_s1 + $0x4] ss:$8 sps:$4 sm:$0xff]   ;;  %v1450_v9 = vld [vmem:[%s2125_s1] ss:$8 sps:$4 sm:$0xff]   ;;  %v1454_v12 = vld [vmem:[%s2125_s1 + $0x214] ss:$8 sps:$4 sm:$0xff]  }
   0x4   :  { %v1448_v6 = vld [vmem:[%s2125_s1 + $0x204] ss:$8 sps:$4 sm:$0xff]   ;;  %406 = vmatprep.subr.bf16.mxu0 %v1446_v5  ;;  %v1451_v10 = vld [vmem:[%s2125_s1 + $0x200] ss:$8 sps:$4 sm:$0xff]   ;;  %v1456_v13 = vld [vmem:[%s2125_s1 + $0x10] ss:$8 sps:$4 sm:$0xff]  }
   0x5   :  { %v24_v7 = vld [vmem:[%s2124_s3 + $0x28] sm:$0xff]  ;;  %695 = vmatprep.subr.bf16.mxu1 %v1448_v6  ;;  %407 = vmatpush1.bf16.msra.mxu0 %v1450_v9  ;;  %v1457_v14 = vld [vmem:[%s2125_s1 + $0x210] ss:$8 sps:$4 sm:$0xff]   ;;  %v1464_v19 = vld [vmem:[%s2125_s1 + $0x34] ss:$8 sps:$4 sm:$0xff]  }
   0x6   :  { %183 = vperm.xlu1 %1445, %v22_v3   ;;  %173 = vperm.xlu0 %1444, %v20_v4   ;;  %v1458_v15 = vld [vmem:[%s2125_s1 + $0x24] ss:$8 sps:$4 sm:$0xff]   ;;  %v1462_v17 = vld [vmem:[%s2125_s1 + $0x20] ss:$8 sps:$4 sm:$0xff]   ;;  %v1466_v20 = vld [vmem:[%s2125_s1 + $0x234] ss:$8 sps:$4 sm:$0xff]  }
   0x7   :  { %696 = vmatpush1.bf16.msra.mxu1 %v1451_v10  ;;  %408 = vmatprep.subr.bf16.mxu0 %v1452_v11  ;;  %v1460_v16 = vld [vmem:[%s2125_s1 + $0x224] ss:$8 sps:$4 sm:$0xff]   ;;  %v1463_v18 = vld [vmem:[%s2125_s1 + $0x220] ss:$8 sps:$4 sm:$0xff]   ;;  %v1468_v21 = vld [vmem:[%s2125_s1 + $0x30] ss:$8 sps:$4 sm:$0xff]  }
   0x8   :  { %697 = vmatprep.subr.bf16.mxu1 %v1454_v12  ;;  %v1469_v22 = vld [vmem:[%s2125_s1 + $0x230] ss:$8 sps:$4 sm:$0xff]   ;;  %v1470_v23 = vld [vmem:[%s2125_s1 + $0x44] ss:$8 sps:$4 sm:$0xff]   ;;  %v1474_v25 = vld [vmem:[%s2125_s1 + $0x40] ss:$8 sps:$4 sm:$0xff]  }
   0x9   :  { %409 = vmatpush1.bf16.msra.mxu0 %v1456_v13  ;;  %v1472_v24 = vld [vmem:[%s2125_s1 + $0x244] ss:$8 sps:$4 sm:$0xff]   ;;  %v1475_v26 = vld [vmem:[%s2125_s1 + $0x240] ss:$8 sps:$4 sm:$0xff]   ;;  %v1476_v27 = vld [vmem:[%s2125_s1 + $0x54] ss:$8 sps:$4 sm:$0xff]  }
   0xa   :  { %193 = vperm.xlu1 %1445, %v24_v7   ;;  %188 = vperm.xlu0 %1444, %v23_v8   ;;  %v1478_v28 = vld [vmem:[%s2125_s1 + $0x254] ss:$8 sps:$4 sm:$0xff]   ;;  %v1480_v29 = vld [vmem:[%s2125_s1 + $0x50] ss:$8 sps:$4 sm:$0xff]   ;;  %v1482_v31 = vld [vmem:[%s2125_s1 + $0x64] ss:$8 sps:$4 sm:$0xff]   ;;  %v45_v8 = vlaneseq }
   0xb   :  { %698 = vmatpush1.bf16.msra.mxu1 %v1457_v14  ;;  %410 = vmatprep.subr.bf16.mxu0 %v1458_v15  ;;  %v1481_v30 = vld [vmem:[%s2125_s1 + $0x250] ss:$8 sps:$4 sm:$0xff]   ;;  %v1484_v32 = vld [vmem:[%s2125_s1 + $0x264] ss:$8 sps:$4 sm:$0xff]   ;;  %v1486_v33 = vld [vmem:[%s2125_s1 + $0x60] ss:$8 sps:$4 sm:$0xff]  }
   0xc   :  { %699 = vmatprep.subr.bf16.mxu1 %v1460_v16  ;;  %v1487_v34 = vld [vmem:[%s2125_s1 + $0x260] ss:$8 sps:$4 sm:$0xff]   ;;  %v1488_v35 = vld [vmem:[%s2125_s1 + $0x74] ss:$8 sps:$4 sm:$0xff]   ;;  %v1492_v37 = vld [vmem:[%s2125_s1 + $0x70] ss:$8 sps:$4 sm:$0xff]  }
   0xd   :  { %411 = vmatpush1.bf16.msra.mxu0 %v1462_v17  ;;  %v1490_v36 = vld [vmem:[%s2125_s1 + $0x274] ss:$8 sps:$4 sm:$0xff]   ;;  %v1493_v38 = vld [vmem:[%s2125_s1 + $0x270] ss:$8 sps:$4 sm:$0xff]   ;;  %v1494_v39 = vld [vmem:[%s2125_s1 + $0x84] ss:$8 sps:$4 sm:$0xff]  }
   0xe   :  { %412 = vmatprep.subr.bf16.mxu0 %v1464_v19  ;;  %v1496_v40 = vld [vmem:[%s2125_s1 + $0x284] ss:$8 sps:$4 sm:$0xff]   ;;  %v1498_v41 = vld [vmem:[%s2125_s1 + $0x80] ss:$8 sps:$4 sm:$0xff]   ;;  %v1500_v43 = vld [vmem:[%s2125_s1 + $0x94] ss:$8 sps:$4 sm:$0xff]  }
   0xf   :  { %700 = vmatpush1.bf16.msra.mxu1 %v1463_v18  ;;  %v1499_v42 = vld [vmem:[%s2125_s1 + $0x280] ss:$8 sps:$4 sm:$0xff]   ;;  %v1502_v44 = vld [vmem:[%s2125_s1 + $0x294] ss:$8 sps:$4 sm:$0xff]   ;;  %v1504_v45 = vld [vmem:[%s2125_s1 + $0x90] ss:$8 sps:$4 sm:$0xff]  }
  0x10   :  { %701 = vmatprep.subr.bf16.mxu1 %v1466_v20  ;;  %v1505_v46 = vld [vmem:[%s2125_s1 + $0x290] ss:$8 sps:$4 sm:$0xff]   ;;  %v1506_v47 = vld [vmem:[%s2125_s1 + $0xa4] ss:$8 sps:$4 sm:$0xff]   ;;  %v1510_v49 = vld [vmem:[%s2125_s1 + $0xa0] ss:$8 sps:$4 sm:$0xff]  }
  0x11   :  { %413 = vmatpush1.bf16.msra.mxu0 %v1468_v21  ;;  %v1508_v48 = vld [vmem:[%s2125_s1 + $0x2a4] ss:$8 sps:$4 sm:$0xff]   ;;  %v1511_v50 = vld [vmem:[%s2125_s1 + $0x2a0] ss:$8 sps:$4 sm:$0xff]   ;;  %v1512_v51 = vld [vmem:[%s2125_s1 + $0xb4] ss:$8 sps:$4 sm:$0xff]  }
  0x12   :  { %414 = vmatprep.subr.bf16.mxu0 %v1470_v23  ;;  %v1514_v52 = vld [vmem:[%s2125_s1 + $0x2b4] ss:$8 sps:$4 sm:$0xff]   ;;  %v1516_v53 = vld [vmem:[%s2125_s1 + $0xb0] ss:$8 sps:$4 sm:$0xff]   ;;  %v1518_v55 = vld [vmem:[%s2125_s1 + $0xc4] ss:$8 sps:$4 sm:$0xff]  }
  0x13   :  { %702 = vmatpush1.bf16.msra.mxu1 %v1469_v22  ;;  %v1517_v54 = vld [vmem:[%s2125_s1 + $0x2b0] ss:$8 sps:$4 sm:$0xff]   ;;  %v1520_v56 = vld [vmem:[%s2125_s1 + $0x2c4] ss:$8 sps:$4 sm:$0xff]   ;;  %v1522_v57 = vld [vmem:[%s2125_s1 + $0xc0] ss:$8 sps:$4 sm:$0xff]  }
  0x14   :  { %703 = vmatprep.subr.bf16.mxu1 %v1472_v24  ;;  %v1523_v58 = vld [vmem:[%s2125_s1 + $0x2c0] ss:$8 sps:$4 sm:$0xff]   ;;  %v1524_v59 = vld [vmem:[%s2125_s1 + $0xd4] ss:$8 sps:$4 sm:$0xff]   ;;  %v1528_v61 = vld [vmem:[%s2125_s1 + $0xd0] ss:$8 sps:$4 sm:$0xff]  }
  0x15   :  { %415 = vmatpush1.bf16.msra.mxu0 %v1474_v25  ;;  %v1526_v60 = vld [vmem:[%s2125_s1 + $0x2d4] ss:$8 sps:$4 sm:$0xff]   ;;  %v1529_v62 = vld [vmem:[%s2125_s1 + $0x2d0] ss:$8 sps:$4 sm:$0xff]   ;;  %v1530_v63 = vld [vmem:[%s2125_s1 + $0xe4] ss:$8 sps:$4 sm:$0xff]  }
  0x16   :  { %416 = vmatprep.subr.bf16.mxu0 %v1476_v27  ;;  %v1532_v0 = vld [vmem:[%s2125_s1 + $0x2e4] ss:$8 sps:$4 sm:$0xff]   ;;  %v1534_v1 = vld [vmem:[%s2125_s1 + $0xe0] ss:$8 sps:$4 sm:$0xff]   ;;  %v1536_v3 = vld [vmem:[%s2125_s1 + $0xf4] ss:$8 sps:$4 sm:$0xff]  }
  0x17   :  { %704 = vmatpush1.bf16.msra.mxu1 %v1475_v26  ;;  %v1535_v2 = vld [vmem:[%s2125_s1 + $0x2e0] ss:$8 sps:$4 sm:$0xff]   ;;  %v1538_v4 = vld [vmem:[%s2125_s1 + $0x2f4] ss:$8 sps:$4 sm:$0xff]   ;;  %v1540_v5 = vld [vmem:[%s2125_s1 + $0xf0] ss:$8 sps:$4 sm:$0xff]  }
  0x18   :  { %705 = vmatprep.subr.bf16.mxu1 %v1478_v28  ;;  %v1541_v6 = vld [vmem:[%s2125_s1 + $0x2f0] ss:$8 sps:$4 sm:$0xff]   ;;  %v1544_v7 = vld [vmem:[%s2125_s1 + $0x104] ss:$8 sps:$4 sm:$0xff]   ;;  %v46_v9 = vshrl.u32 %v45_v8, 7 }
  0x19   :  { %417 = vmatpush1.bf16.msra.mxu0 %v1480_v29  ;;  %v27_v12 = vld [vmem:[%s2126_s0 + $0x10] sm:$0xff]  ;;  %v43_v13 = vld [vmem:[%s2127_s2] ss:$8 sm:$0x3]  ;;  %v28_v15 = vld [vmem:[%s2126_s0 + $0x18] sm:$0xff] }
  0x1a   :  { %418 = vmatprep.subr.bf16.mxu0 %v1482_v31  ;;  %v47_v10 = vsub.s32 0, %v46_v9  ;;  %v51_v11 = vsub.s32 1, %v46_v9  ;;  %v25_v14 = vld [vmem:[%s2126_s0] sm:$0xff]  ;;  %v35_v16 = vunpack.c.l.bf16 %v27_v12  ;;  %v36_v17 = vunpack.c.h.bf16 %v27_v12  ;;  %v26_v18 = vld [vmem:[%s2126_s0 + $0x8] sm:$0xff] }
  0x1b   :  { %706 = vmatpush1.bf16.msra.mxu1 %v1481_v30  ;;  %v1236_v21 = vld [vmem:[%s2127_s2 + $0x1] ss:$8 sm:$0x3]  ;;  %v31_v22 = vunpack.c.l.bf16 %v25_v14  ;;  %v32_v23 = vunpack.c.h.bf16 %v25_v14  ;;  %v37_v24 = vunpack.c.l.bf16 %v28_v15  ;;  %v38_v25 = vunpack.c.h.bf16 %v28_v15  ;;  %v1237_v26 = vld [vmem:[%s2127_s2 + $0x2] ss:$8 sm:$0x3] }
  0x1c   :  { %707 = vmatprep.subr.bf16.mxu1 %v1484_v32  ;;  %v48_v19 = vrot.slane %v43_v13, %v47_v10  ;;  %v52_v20 = vrot.slane %v43_v13, %v51_v11  ;;  %v33_v27 = vunpack.c.l.bf16 %v26_v18  ;;  %v34_v28 = vunpack.c.h.bf16 %v26_v18 }
  0x1d   :  { %419 = vmatpush1.bf16.msra.mxu0 %v1486_v33  ;;  %v1855_v29 = vrot.slane %v1236_v21, %v47_v10  ;;  %v77_v30 = vrot.slane %v1236_v21, %v51_v11 }
  0x1e   :  { %420 = vmatprep.subr.bf16.mxu0 %v1488_v35  ;;  %v59_v31 = vsub.f32 %v35_v16, %v48_v19  ;;  %v60_v32 = vsub.f32 %v36_v17, %v52_v20  ;;  %v55_v33 = vsub.f32 %v31_v22, %v48_v19  ;;  %v1857_v35 = vrot.slane %v1237_v26, %v47_v10 }
  0x1f   :  { %708 = vmatpush1.bf16.msra.mxu1 %v1487_v34  ;;  %v56_v34 = vsub.f32 %v32_v23, %v52_v20 }
  0x20   :  { %709 = vmatprep.subr.bf16.mxu1 %v1490_v36  ;;  %v102_v36 = vrot.slane %v1237_v26, %v51_v11 }
  0x21   :  { %421 = vmatpush1.bf16.msra.mxu0 %v1492_v37  ;;  %v61_v37 = vsub.f32 %v37_v24, %v48_v19 }
  0x22   :  { %422 = vmatprep.subr.bf16.mxu0 %v1494_v39  ;;  %v57_v39 = vsub.f32 %v33_v27, %v48_v19 }
  0x23   :  { %710 = vmatpush1.bf16.msra.mxu1 %v1493_v38  ;;  %v62_v38 = vsub.f32 %v38_v25, %v52_v20 }
  0x24   :  { %711 = vmatprep.subr.bf16.mxu1 %v1496_v40  ;;  %v58_v40 = vsub.f32 %v34_v28, %v52_v20 }
  0x25   :  { %423 = vmatpush1.bf16.msra.mxu0 %v1498_v41  ;;  %v85_v41 = vmul.f32 %v77_v30, %v60_v32 }
  0x26   :  { %424 = vmatprep.subr.bf16.mxu0 %v1500_v43  ;;  %v80_v43 = vmul.f32 %v1855_v29, %v55_v33 }
  0x27   :  { %712 = vmatpush1.bf16.msra.mxu1 %v1499_v42  ;;  %v110_v42 = vmul.f32 %v102_v36, %v59_v31 }
  0x28   :  { %713 = vmatprep.subr.bf16.mxu1 %v1502_v44  ;;  %v81_v44 = vmul.f32 %v77_v30, %v56_v34 }
  0x29   :  { %425 = vmatpush1.bf16.msra.mxu0 %v1504_v45  ;;  %v30_v45 = vld [vmem:[%s2126_s0 + $0x28] sm:$0xff] }
  0x2a   :  { %426 = vmatprep.subr.bf16.mxu0 %v1506_v47  ;;  %v1238_v47 = vld [vmem:[%s2127_s2 + $0x3] ss:$8 sm:$0x3] }
  0x2b   :  { %714 = vmatpush1.bf16.msra.mxu1 %v1505_v46  ;;  %v29_v46 = vld [vmem:[%s2126_s0 + $0x20] sm:$0xff] }
  0x2c   :  { %715 = vmatprep.subr.bf16.mxu1 %v1508_v48  ;;  %v105_v48 = vmul.f32 %v1857_v35, %v56_v34 }
  0x2d   :  { %427 = vmatpush1.bf16.msra.mxu0 %v1510_v49  ;;  %v106_v49 = vmul.f32 %v102_v36, %v55_v33 }
  0x2e   :  { %428 = vmatprep.subr.bf16.mxu0 %v1512_v51  ;;  %v112_v51 = vmul.f32 %v102_v36, %v61_v37 }
  0x2f   :  { %716 = vmatpush1.bf16.msra.mxu1 %v1511_v50  ;;  %v87_v50 = vmul.f32 %v77_v30, %v62_v38 }
  0x30   :  { %717 = vmatprep.subr.bf16.mxu1 %v1514_v52  ;;  %v82_v52 = vmul.f32 %v1855_v29, %v57_v39 }
  0x31   :  { %429 = vmatpush1.bf16.msra.mxu0 %v1516_v53  ;;  %v83_v53 = vmul.f32 %v77_v30, %v58_v40 }
  0x32   :  { %430 = vmatprep.subr.bf16.mxu0 %v1518_v55  ;;  %v108_v55 = vmul.f32 %v102_v36, %v57_v39 }
  0x33   :  { %718 = vmatpush1.bf16.msra.mxu1 %v1517_v54  ;;  %v107_v54 = vmul.f32 %v1857_v35, %v58_v40 }
  0x34   :  { %719 = vmatprep.subr.bf16.mxu1 %v1520_v56  ;;  %v41_v56 = vunpack.c.l.bf16 %v30_v45 }
  0x35   :  { %431 = vmatpush1.bf16.msra.mxu0 %v1522_v57  ;;  %v42_v57 = vunpack.c.h.bf16 %v30_v45 }
  0x36   :  { %432 = vmatprep.subr.bf16.mxu0 %v1524_v59  ;;  %v40_v59 = vunpack.c.h.bf16 %v29_v46  ;;  %v65_v8 = vsub.f32 %v41_v56, %v48_v19 }
  0x37   :  { %720 = vmatpush1.bf16.msra.mxu1 %v1523_v58  ;;  %v39_v58 = vunpack.c.l.bf16 %v29_v46  ;;  %v66_v9 = vsub.f32 %v42_v57, %v52_v20  ;;  %v1547_v57 = vld [vmem:[%s2125_s1 + $0x114] ss:$8 sps:$4 sm:$0xff]  }
  0x38   :  { %721 = vmatprep.subr.bf16.mxu1 %v1526_v60  ;;  %v84_v60 = vmul.f32 %v1855_v29, %v59_v31  ;;  %v64_v13 = vsub.f32 %v40_v59, %v52_v20  ;;  %v116_v23 = vmul.f32 %v102_v36, %v65_v8  ;;  %v90_v40 = vmul.f32 %v1855_v29, %v65_v8 }
  0x39   :  { %433 = vmatpush1.bf16.msra.mxu0 %v1528_v61  ;;  %v109_v61 = vmul.f32 %v1857_v35, %v60_v32  ;;  %v63_v12 = vsub.f32 %v39_v58, %v48_v19  ;;  %v91_v22 = vmul.f32 %v77_v30, %v66_v9 }
  0x3a   :  { %434 = vmatprep.subr.bf16.mxu0 %v1530_v63  ;;  %v139_v63 = vrot.slane %v1238_v47, %v51_v11  ;;  %v89_v24 = vmul.f32 %v77_v30, %v64_v13  ;;  %v115_v30 = vmul.f32 %v1857_v35, %v66_v9  ;;  %v113_v45 = vmul.f32 %v1857_v35, %v64_v13  ;;  %v1553_v13 = vld [vmem:[%s2125_s1 + $0x134] ss:$8 sps:$4 sm:$0xff]  }
  0x3b   :  { %722 = vmatpush1.bf16.msra.mxu1 %v1529_v62  ;;  %v1874_v62 = vrot.slane %v1238_v47, %v47_v10  ;;  %v121_v14 = vadd.f32 %v109_v61, %v84_v60  ;;  %v114_v25 = vmul.f32 %v102_v36, %v63_v12 }
  0x3c   :  { %723 = vmatprep.subr.bf16.mxu1 %v1532_v0  ;;  %v122_v0 = vadd.f32 %v110_v42, %v85_v41 }
  0x3d   :  { %435 = vmatpush1.bf16.msra.mxu0 %v1534_v1  ;;  %v117_v1 = vadd.f32 %v105_v48, %v80_v43  ;;  %v146_v34 = vadd.f32 %v1874_v62, %v121_v14  ;;  %v126_v39 = vadd.f32 %v114_v25, %v89_v24  ;;  %v1560_v24 = vld [vmem:[%s2125_s1 + $0x160] ss:$8 sps:$4 sm:$0xff]   ;;  %v1565_v25 = vld [vmem:[%s2125_s1 + $0x174] ss:$8 sps:$4 sm:$0xff]  }
  0x3e   :  { %436 = vmatprep.subr.bf16.mxu0 %v1536_v3  ;;  %v86_v3 = vmul.f32 %v1855_v29, %v61_v37  ;;  %v147_v15 = vadd.f32 %v139_v63, %v122_v0 }
  0x3f   :  { %724 = vmatpush1.bf16.msra.mxu1 %v1535_v2  ;;  %v118_v2 = vadd.f32 %v106_v49, %v81_v44  ;;  %v142_v10 = vadd.f32 %v1874_v62, %v117_v1  ;;  %v88_v44 = vmul.f32 %v1855_v29, %v63_v12 }
  0x40   :  { %725 = vmatprep.subr.bf16.mxu1 %v1538_v4  ;;  %v111_v4 = vmul.f32 %v1857_v35, %v62_v38  ;;  %v159_v27 = vmax.f32 %v147_v15, 0.0  ;;  %v128_v38 = vadd.f32 %v116_v23, %v91_v22  ;;  %v127_v35 = vadd.f32 %v115_v30, %v90_v40  ;;  %v1551_v15 = vld [vmem:[%s2125_s1 + $0x130] ss:$8 sps:$4 sm:$0xff]   ;;  %v1562_v23 = vld [vmem:[%s2125_s1 + $0x164] ss:$8 sps:$4 sm:$0xff]  }
  0x41   :  { %437 = vmatpush1.bf16.msra.mxu0 %v1540_v5  ;;  %v124_v5 = vadd.f32 %v112_v51, %v87_v50  ;;  %v143_v16 = vadd.f32 %v139_v63, %v118_v2  ;;  %v154_v19 = vmax.f32 %v142_v10, 0.0  ;;  %v158_v50 = vmax.f32 %v146_v34, 0.0  ;;  %v1545_v2 = vld [vmem:[%s2125_s1 + $0x110] ss:$8 sps:$4 sm:$0xff]   ;;  %v1572_v34 = vld [vmem:[%s2125_s1 + $0x1a0] ss:$8 sps:$4 sm:$0xff]  }
  0x42   :  { %967 = vmatprep.subr.bf16.mxu0 %v1544_v7  ;;  %v123_v11 = vadd.f32 %v111_v4, %v86_v3  ;;  %v125_v56 = vadd.f32 %v113_v45, %v88_v44  ;;  %v152_v3 = vadd.f32 %v1874_v62, %v127_v35  ;;  %v1557_v22 = vld [vmem:[%s2125_s1 + $0x150] ss:$8 sps:$4 sm:$0xff]   ;;  %v1578_v40 = vld [vmem:[%s2125_s1 + $0x1c0] ss:$8 sps:$4 sm:$0xff]   ;;  %v1583_v30 = vld [vmem:[%s2125_s1 + $0x1d4] ss:$8 sps:$4 sm:$0xff]  }
  0x43   :  { %726 = vmatpush1.bf16.msra.mxu1 %v1541_v6  ;;  %v119_v6 = vadd.f32 %v107_v54, %v82_v52  ;;  %v149_v17 = vadd.f32 %v139_v63, %v124_v5  ;;  %v155_v20 = vmax.f32 %v143_v16, 0.0  ;;  %v153_v52 = vadd.f32 %v139_v63, %v128_v38  ;;  %v1550_v5 = vld [vmem:[%s2125_s1 + $0x124] ss:$8 sps:$4 sm:$0xff]   ;;  %v1575_v38 = vld [vmem:[%s2125_s1 + $0x1b0] ss:$8 sps:$4 sm:$0xff]  }
  0x44   :  { %1411 = vmatprep.subr.bf16.mxu1 %v1544_v7  ;;  %v120_v7 = vadd.f32 %v108_v55, %v83_v53  ;;  %v148_v37 = vadd.f32 %v1874_v62, %v123_v11  ;;  %v151_v53 = vadd.f32 %v139_v63, %v126_v39  ;;  %v1542_v55 = vld [vmem:[%s2125_s1 + $0x100] ss:$8 sps:$4 sm:$0xff]   ;;  %v150_v4 = vadd.f32 %v1874_v62, %v125_v56  ;;  %v1556_v11 = vld [vmem:[%s2125_s1 + $0x144] ss:$8 sps:$4 sm:$0xff]   ;;  %v1589_v45 = vld [vmem:[%s2125_s1 + $0x1f4] ss:$8 sps:$4 sm:$0xff]  }
  0x45   :  { %v144_v18 = vadd.f32 %v1874_v62, %v119_v6  ;;  %v161_v31 = vmax.f32 %v149_v17, 0.0  ;;  %v165_v61 = vmax.f32 %v153_v52, 0.0  ;;  %v1548_v62 = vld [vmem:[%s2125_s1 + $0x120] ss:$8 sps:$4 sm:$0xff]   ;;  %v164_v9 = vmax.f32 %v152_v3, 0.0 }
  0x46   :  { %v145_v21 = vadd.f32 %v139_v63, %v120_v7  ;;  %v160_v51 = vmax.f32 %v148_v37, 0.0  ;;  %v163_v63 = vmax.f32 %v151_v53, 0.0  ;;  %v162_v12 = vmax.f32 %v150_v4, 0.0  ;;  %v1554_v17 = vld [vmem:[%s2125_s1 + $0x140] ss:$8 sps:$4 sm:$0xff]  }
  0x47   :  { %v156_v32 = vmax.f32 %v144_v18, 0.0  ;;  %v1577_v37 = vld [vmem:[%s2125_s1 + $0x1b4] ss:$8 sps:$4 sm:$0xff]   ;;  %v1580_v39 = vld [vmem:[%s2125_s1 + $0x1c4] ss:$8 sps:$4 sm:$0xff]  }
  0x48   :  { %v157_v33 = vmax.f32 %v145_v21, 0.0  ;;  %v1559_v21 = vld [vmem:[%s2125_s1 + $0x154] ss:$8 sps:$4 sm:$0xff]   ;;  %v1584_v44 = vld [vmem:[%s2125_s1 + $0x1e0] ss:$8 sps:$4 sm:$0xff]  }
  0x81   :  { %v1880_v26 = vpop.permute.xlu1 %178  ;;  %v1882_v28 = vpop.permute.xlu0 %168 }
  0x82   :  { %v201_v36 = vmul.f32 %v1880_v26, %v159_v27  ;;  %v196_v41 = vmul.f32 %v1882_v28, %v154_v19  ;;  %v197_v46 = vmul.f32 %v1882_v28, %v155_v20  ;;  %v200_v59 = vmul.f32 %v1880_v26, %v158_v50  ;;  %v1563_v27 = vld [vmem:[%s2125_s1 + $0x170] ss:$8 sps:$4 sm:$0xff]   ;;  %v1568_v19 = vld [vmem:[%s2125_s1 + $0x184] ss:$8 sps:$4 sm:$0xff]   ;;  %v1566_v20 = vld [vmem:[%s2125_s1 + $0x180] ss:$8 sps:$4 sm:$0xff]  }
  0x85   :  { %v1890_v42 = vpop.permute.xlu1 %183  ;;  %v1892_v43 = vpop.permute.xlu0 %173 }
  0x86   :  { %v203_v47 = vmul.f32 %v1890_v42, %v161_v31  ;;  %v198_v48 = vmul.f32 %v1892_v43, %v156_v32  ;;  %v199_v49 = vmul.f32 %v1892_v43, %v157_v33  ;;  %v202_v60 = vmul.f32 %v1890_v42, %v160_v51  ;;  %v1571_v31 = vld [vmem:[%s2125_s1 + $0x194] ss:$8 sps:$4 sm:$0xff]   ;;  %v1569_v32 = vld [vmem:[%s2125_s1 + $0x190] ss:$8 sps:$4 sm:$0xff]   ;;  %v1574_v33 = vld [vmem:[%s2125_s1 + $0x1a4] ss:$8 sps:$4 sm:$0xff]  }
  0x88   :  { %v209_v54 = vpack.c.bf16 %v199_v49, %v197_v46  ;;  %v1903_v29 = vpack.c.bf16 %v198_v48, %v196_v41  ;;  %v211_v58 = vpack.c.bf16 %v203_v47, %v201_v36  ;;  %v1926_v8 = vpack.c.bf16 %v202_v60, %v200_v59  ;;  %v1581_v36 = vld [vmem:[%s2125_s1 + $0x1d0] ss:$8 sps:$4 sm:$0xff]   ;;  %v1586_v41 = vld [vmem:[%s2125_s1 + $0x1e4] ss:$8 sps:$4 sm:$0xff]  }
  0x89   :  { %v1911_v0 = vpop.permute.xlu1 %193  ;;  %v1913_v1 = vpop.permute.xlu0 %188  ;;  %v1587_v46 = vld [vmem:[%s2125_s1 + $0x1f0] ss:$8 sps:$4 sm:$0xff]  }
  0x8a   :  { %438 = vmatprep.mubr.bf16.mxu0 %v209_v54  ;;  %727 = vmatprep.mubr.bf16.mxu1 %v209_v54  ;;  %v207_v6 = vmul.f32 %v1911_v0, %v165_v61  ;;  %v205_v7 = vmul.f32 %v1913_v1, %v163_v63  ;;  %v206_v10 = vmul.f32 %v1911_v0, %v164_v9 }
  0x8b   :  { %439 = vmatmul.mubr.bf16.vlgmr.msra.gmra.mrb[0].mxu0 %v1903_v29  ;;  %728 = vmatmul.mubr.bf16.vlgmr.msra.gmra.mrb[0].mxu1 %v1903_v29  ;;  %v204_v16 = vmul.f32 %v1913_v1, %v162_v12 }
  0x8c   :  { %968 = vmatpush1.bf16.msra.mxu0 %v1542_v55  ;;  %1427 = vmatpush1.bf16.msra.mxu1 %v1542_v55  ;;  %v1935_v14 = vpack.c.bf16 %v207_v6, %v205_v7 }
  0x8d   :  { %969 = vmatprep.subr.bf16.mxu0 %v1547_v57  ;;  %1412 = vmatprep.subr.bf16.mxu1 %v1547_v57  ;;  %v1951_v18 = vpack.c.bf16 %v206_v10, %v204_v16 }
  0x8e   :  { %448 = vmatprep.mubr.bf16.mxu0 %v211_v58  ;;  %737 = vmatprep.mubr.bf16.mxu1 %v211_v58 }
  0x90   :  { %970 = vmatpush1.bf16.msra.mxu0 %v1545_v2  ;;  %1428 = vmatpush1.bf16.msra.mxu1 %v1545_v2 }
  0x91   :  { %971 = vmatprep.subr.bf16.mxu0 %v1550_v5  ;;  %1413 = vmatprep.subr.bf16.mxu1 %v1550_v5 }
  0x93   :  { %449 = vmatmul.mubr.bf16.gmra.mrb[4].mxu0 %v1926_v8  ;;  %738 = vmatmul.mubr.bf16.gmra.mrb[4].mxu1 %v1926_v8 }
  0x94   :  { %972 = vmatpush1.bf16.msra.mxu0 %v1548_v62  ;;  %1429 = vmatpush1.bf16.msra.mxu1 %v1548_v62 }
  0x95   :  { %458 = vmatprep.mubr.bf16.mxu0 %v1935_v14  ;;  %747 = vmatprep.mubr.bf16.mxu1 %v1935_v14 }
  0x96   :  { %973 = vmatprep.subr.bf16.mxu0 %v1553_v13  ;;  %1414 = vmatprep.subr.bf16.mxu1 %v1553_v13 }
  0x98   :  { %974 = vmatpush1.bf16.msra.mxu0 %v1551_v15  ;;  %1430 = vmatpush1.bf16.msra.mxu1 %v1551_v15 }
  0x99   :  { %975 = vmatprep.subr.bf16.mxu0 %v1556_v11  ;;  %1415 = vmatprep.subr.bf16.mxu1 %v1556_v11 }
  0x9b   :  { %459 = vmatmul.mubr.bf16.gmra.mrb[8].mxu0 %v1951_v18  ;;  %748 = vmatmul.mubr.bf16.gmra.mrb[8].mxu1 %v1951_v18 }
  0x9c   :  { %976 = vmatpush1.bf16.msra.mxu0 %v1554_v17  ;;  %1431 = vmatpush1.bf16.msra.mxu1 %v1554_v17 }
  0x9d   :  { %999 = vmatprep.mubr.bf16.mxu0 %v209_v54  ;;  %977 = vmatprep.subr.bf16.mxu0 %v1559_v21 }
  0x9e   :  { %1416 = vmatprep.subr.bf16.mxu1 %v1559_v21  ;;  %1009 = vmatprep.mubr.bf16.mxu1 %v211_v58 }
  0xa0   :  { %978 = vmatpush1.bf16.msra.mxu0 %v1557_v22  ;;  %1432 = vmatpush1.bf16.msra.mxu1 %v1557_v22 }
  0xa1   :  { %979 = vmatprep.subr.bf16.mxu0 %v1562_v23  ;;  %1417 = vmatprep.subr.bf16.mxu1 %v1562_v23 }
  0xa4   :  { %980 = vmatpush1.bf16.msra.mxu0 %v1560_v24  ;;  %1433 = vmatpush1.bf16.msra.mxu1 %v1560_v24 }
  0xa5   :  { %981 = vmatprep.subr.bf16.mxu0 %v1565_v25  ;;  %1418 = vmatprep.subr.bf16.mxu1 %v1565_v25 }
  0xa8   :  { %982 = vmatpush1.bf16.msra.mxu0 %v1563_v27  ;;  %1434 = vmatpush1.bf16.msra.mxu1 %v1563_v27 }
  0xa9   :  { %983 = vmatprep.subr.bf16.mxu0 %v1568_v19  ;;  %1419 = vmatprep.subr.bf16.mxu1 %v1568_v19 }
  0xac   :  { %984 = vmatpush1.bf16.msra.mxu0 %v1566_v20  ;;  %1435 = vmatpush1.bf16.msra.mxu1 %v1566_v20 }
  0xad   :  { %985 = vmatprep.subr.bf16.mxu0 %v1571_v31  ;;  %1420 = vmatprep.subr.bf16.mxu1 %v1571_v31 }
  0xb0   :  { %986 = vmatpush1.bf16.msra.mxu0 %v1569_v32  ;;  %1436 = vmatpush1.bf16.msra.mxu1 %v1569_v32 }
  0xb1   :  { %987 = vmatprep.subr.bf16.mxu0 %v1574_v33  ;;  %1421 = vmatprep.subr.bf16.mxu1 %v1574_v33 }
  0xb4   :  { %988 = vmatpush1.bf16.msra.mxu0 %v1572_v34  ;;  %1437 = vmatpush1.bf16.msra.mxu1 %v1572_v34 }
  0xb5   :  { %989 = vmatprep.subr.bf16.mxu0 %v1577_v37  ;;  %1422 = vmatprep.subr.bf16.mxu1 %v1577_v37 }
  0xb8   :  { %990 = vmatpush1.bf16.msra.mxu0 %v1575_v38  ;;  %1438 = vmatpush1.bf16.msra.mxu1 %v1575_v38 }
  0xb9   :  { %991 = vmatprep.subr.bf16.mxu0 %v1580_v39  ;;  %1423 = vmatprep.subr.bf16.mxu1 %v1580_v39 }
  0xbc   :  { %992 = vmatpush1.bf16.msra.mxu0 %v1578_v40  ;;  %1439 = vmatpush1.bf16.msra.mxu1 %v1578_v40 }
  0xbd   :  { %993 = vmatprep.subr.bf16.mxu0 %v1583_v30  ;;  %1424 = vmatprep.subr.bf16.mxu1 %v1583_v30 }
  0xc0   :  { %994 = vmatpush1.bf16.msra.mxu0 %v1581_v36  ;;  %1440 = vmatpush1.bf16.msra.mxu1 %v1581_v36 }
  0xc1   :  { %995 = vmatprep.subr.bf16.mxu0 %v1586_v41  ;;  %1425 = vmatprep.subr.bf16.mxu1 %v1586_v41 }
  0xc4   :  { %996 = vmatpush1.bf16.msra.mxu0 %v1584_v44  ;;  %1441 = vmatpush1.bf16.msra.mxu1 %v1584_v44 }
  0xc5   :  { %997 = vmatprep.subr.bf16.mxu0 %v1589_v45  ;;  %1426 = vmatprep.subr.bf16.mxu1 %v1589_v45 }
  0xc8   :  { %998 = vmatpush1.bf16.msra.mxu0 %v1587_v46  ;;  %1442 = vmatpush1.bf16.msra.mxu1 %v1587_v46 }
  0xcb   :  { %1000 = vmatmul.mubr.bf16.vlgmr.msra.gmra.mrb[12].mxu0 %v1903_v29  ;;  %1010 = vmatmul.mubr.bf16.vlgmr.msra.gmra.mrb[12].mxu1 %v1926_v8 }
  0xcc   :  { %1019 = vmatprep.mubr.bf16.mxu1 %v1935_v14 }
  0xd3   :  { %1020 = vmatmul.mubr.bf16.gmra.mrb[16].mxu1 %v1951_v18 }
 0x15e   :  { %v2025_v47 = vpop.f32.mrb[0].mxu0  ;;  %v729_v48 = vpop.f32.mrb[0].mxu1 }
 0x15f   :  { %v2027_v49 = vpop.f32.mrb[1].mxu0  ;;  %v731_v50 = vpop.f32.mrb[1].mxu1  ;;  %v771_v52 = vrot.slane %v2025_v47, 7  ;;  %v1043_v29 = vrot.slane %v729_v48, 1 }
 0x160   :  { %v444_v51 = vpop.f32.mrb[2].mxu0  ;;  %v733_v54 = vpop.f32.mrb[2].mxu1  ;;  %v772_v35 = vrot.slane %v2027_v49, 7  ;;  %v1046_v59 = vrot.slane %v731_v50, 1 }
 0x161   :  { %v773_v53 = vrot.slane %v444_v51, 7  ;;  %v446_v55 = vpop.f32.mrb[3].mxu0  ;;  %v1044_v56 = vrot.slane %v733_v54, 1  ;;  %v735_v58 = vpop.f32.mrb[3].mxu1 }
 0x162   :  { %v775_v57 = vrot.slane %v446_v55, 7  ;;  %v1047_v60 = vrot.slane %v735_v58, 1  ;;  %v805_v58 = vsel %vm770_vm1, 0.0, %v771_v52 }
 0x163   :  { %v2034_v61 = vsel %vm770_vm1, %v771_v52, %v773_v53  ;;  %v1045_v63 = vsel %vm1042_vm0, %v1043_v29, %v1044_v56 }
 0x164   :  { %v2038_v2 = vsel %vm770_vm1, %v772_v35, %v775_v57  ;;  %v2041_v3 = vsel %vm1042_vm0, %v1046_v59, %v1047_v60 }
 0x166   :  { %v450_v4 = vpop.f32.mrb[4].mxu0  ;;  %v739_v6 = vpop.f32.mrb[4].mxu1 }
 0x167   :  { %v777_v5 = vrot.slane %v450_v4, 7  ;;  %v452_v7 = vpop.f32.mrb[5].mxu0  ;;  %v1049_v8 = vrot.slane %v739_v6, 1  ;;  %v741_v9 = vpop.f32.mrb[5].mxu1 }
 0x168   :  { %v779_v62 = vrot.slane %v452_v7, 7  ;;  %v454_v12 = vpop.f32.mrb[6].mxu0  ;;  %v1051_v13 = vrot.slane %v741_v9, 1  ;;  %v743_v15 = vpop.f32.mrb[6].mxu1 }
 0x169   :  { %v781_v14 = vrot.slane %v454_v12, 7  ;;  %v456_v10 = vpop.f32.mrb[7].mxu0  ;;  %v778_v16 = vsel %vm770_vm1, %v773_v53, %v777_v5  ;;  %v1053_v11 = vrot.slane %v743_v15, 1  ;;  %v745_v18 = vpop.f32.mrb[7].mxu1  ;;  %v1050_v22 = vsel %vm1042_vm0, %v1044_v56, %v1049_v8 }
 0x16a   :  { %v783_v17 = vrot.slane %v456_v10, 7  ;;  %v780_v21 = vsel %vm770_vm1, %v775_v57, %v779_v62  ;;  %v1055_v23 = vrot.slane %v745_v18, 1  ;;  %v1052_v25 = vsel %vm1042_vm0, %v1047_v60, %v1051_v13 }
 0x16b   :  { %v782_v24 = vsel %vm770_vm1, %v777_v5, %v781_v14  ;;  %v1054_v27 = vsel %vm1042_vm0, %v1049_v8, %v1053_v11  ;;  %v806_v5 = vsel %vm770_vm1, 0.0, %v772_v35 }
 0x16c   :  { %v784_v19 = vsel %vm770_vm1, %v779_v62, %v783_v17  ;;  %v1056_v20 = vsel %vm1042_vm0, %v1051_v13, %v1055_v23 }
 0x16e   :  { %v460_v31 = vpop.f32.mrb[8].mxu0  ;;  %v749_v33 = vpop.f32.mrb[8].mxu1 }
 0x16f   :  { %v785_v32 = vrot.slane %v460_v31, 7  ;;  %v462_v34 = vpop.f32.mrb[9].mxu0  ;;  %v1057_v37 = vrot.slane %v749_v33, 1  ;;  %v751_v39 = vpop.f32.mrb[9].mxu1 }
 0x170   :  { %v787_v38 = vrot.slane %v462_v34, 7  ;;  %v464_v40 = vpop.f32.mrb[10].mxu0  ;;  %v1059_v30 = vrot.slane %v751_v39, 1  ;;  %v753_v41 = vpop.f32.mrb[10].mxu1 }
 0x171   :  { %v789_v36 = vrot.slane %v464_v40, 7  ;;  %v466_v44 = vpop.f32.mrb[11].mxu0  ;;  %v2052_v45 = vsel %vm770_vm1, %v781_v14, %v785_v32  ;;  %v1061_v46 = vrot.slane %v753_v41, 1  ;;  %v2054_v49 = vpop.f32.mrb[11].mxu1  ;;  %v1058_v50 = vsel %vm1042_vm0, %v1053_v11, %v1057_v37 }
 0x172   :  { %v791_v48 = vrot.slane %v466_v44, 7  ;;  %v788_v51 = vsel %vm770_vm1, %v783_v17, %v787_v38  ;;  %v1063_v53 = vrot.slane %v2054_v49, 1  ;;  %v1060_v54 = vsel %vm1042_vm0, %v1055_v23, %v1059_v30 }
 0x173   :  { %v2061_v55 = vsel %vm770_vm1, %v785_v32, %v789_v36  ;;  %v2064_v29 = vsel %vm1042_vm0, %v1057_v37, %v1061_v46  ;;  %v1077_v33 = vsel %vm1042_vm0, %v1061_v46, 0.0 }
 0x174   :  { %v2067_v56 = vsel %vm770_vm1, %v787_v38, %v791_v48  ;;  %v2072_v57 = vsel %vm1042_vm0, %v1059_v30, %v1063_v53 }
 0x19e   :  { %v1001_v59 = vpop.f32.mrb[12].mxu0  ;;  %v1011_v4 = vpop.f32.mrb[12].mxu1 }
 0x19f   :  { %v1002_v60 = vadd.f32 %v1001_v59, %v805_v58  ;;  %v1003_v6 = vpop.f32.mrb[13].mxu0  ;;  %v1012_v7 = vadd.f32 %v1011_v4, %v778_v16  ;;  %v1013_v62 = vpop.f32.mrb[13].mxu1 }
 0x1a0   :  { %v1004_v8 = vadd.f32 %v1003_v6, %v806_v5  ;;  %v1005_v9 = vpop.f32.mrb[14].mxu0  ;;  %v1014_v13 = vadd.f32 %v1013_v62, %v780_v21  ;;  %v1015_v15 = vpop.f32.mrb[14].mxu1 }
 0x1a1   :  { %v1079_v12 = vadd.f32 %v1045_v63, %v1002_v60  ;;  %v1006_v14 = vadd.f32 %v1005_v9, %v2034_v61  ;;  %v1007_v10 = vpop.f32.mrb[15].mxu0  ;;  %v1083_v11 = vadd.f32 %v1054_v27, %v1012_v7  ;;  %v1016_v52 = vadd.f32 %v1015_v15, %v782_v24  ;;  %v1017_v18 = vpop.f32.mrb[15].mxu1 }
 0x1a2   :  { %v1080_v47 = vadd.f32 %v2041_v3, %v1004_v8  ;;  %v1008_v17 = vadd.f32 %v1007_v10, %v2038_v2  ;;  %v1084_v23 = vadd.f32 %v1056_v20, %v1014_v13  ;;  %v1018_v31 = vadd.f32 %v1017_v18, %v784_v19 }
 0x1a3   :  { %v1091_v35 = vmul.f32 %v1079_v12, %v1882_v28  ;;  %v1081_v16 = vadd.f32 %v1050_v22, %v1006_v14  ;;  %v1095_v32 = vmul.f32 %v1083_v11, %v1880_v26  ;;  %v1085_v21 = vadd.f32 %v1058_v50, %v1016_v52 }
 0x1a4   :  { %v1092_v63 = vmul.f32 %v1080_v47, %v1882_v28  ;;  %v1082_v61 = vadd.f32 %v1052_v25, %v1008_v17  ;;  %v1096_v27 = vmul.f32 %v1084_v23, %v1880_v26  ;;  %v1086_v24 = vadd.f32 %v1060_v54, %v1018_v31 }
 0x1a5   :  { %v1093_v3 = vmul.f32 %v1081_v16, %v1892_v43  ;;  %v1125_v2 = vmul.f32 %v1091_v35, %v1091_v35  ;;  %v1127_v34 = vmul.f32 %v1095_v32, %v1095_v32  ;;  %v1097_v25 = vmul.f32 %v1085_v21, %v1890_v42 }
 0x1a6   :  { %v1159_v37 = vmul.f32 %v1092_v63, %v1091_v35  ;;  %v1405_v38 = vpack.c.bf16 %v1092_v63, %v1091_v35  ;;  %v1142_v20 = vmul.f32 %v1092_v63, %v1092_v63  ;;  %v1161_v22 = vmul.f32 %v1096_v27, %v1095_v32  ;;  %v1021_v40 = vpop.f32.mrb[16].mxu1 }
 0x1a7   :  { %v1407_v19 = vpack.c.bf16 %v1096_v27, %v1095_v32  ;;  %v1103_v39 = vadd.f32 %v1093_v3, %v1091_v35  ;;  %v1126_v28 = vmul.f32 %v1093_v3, %v1093_v3  ;;  %v1094_v26 = vmul.f32 %v1082_v61, %v1892_v43  ;;  %v1023_v36 = vpop.f32.mrb[17].mxu1 }
 0x1a8   :  { %1222 = vst [vmem:[%s2128_s4] sm:$0xff] %v1405_v38  ;;  %v1098_v30 = vmul.f32 %v1086_v24, %v1890_v42  ;;  %v1144_v41 = vmul.f32 %v1096_v27, %v1096_v27  ;;  %v1022_v46 = vadd.f32 %v1021_v40, %v2052_v45  ;;  %v1024_v48 = vadd.f32 %v1023_v36, %v788_v51  ;;  %v1025_v50 = vpop.f32.mrb[18].mxu1 }
 0x1a9   :  { %1224 = vst [vmem:[%s2128_s4 + $0x10] sm:$0xff] %v1407_v19  ;;  %v1104_v44 = vadd.f32 %v1103_v39, %v1095_v32  ;;  %v1131_v54 = vadd.f32 %v1126_v28, %v1125_v2  ;;  %v1128_v58 = vmul.f32 %v1097_v25, %v1097_v25  ;;  %v1114_v59 = vadd.f32 %v1094_v26, %v1092_v63  ;;  %v1027_v4 = vpop.f32.mrb[19].mxu1 }
 0x1aa   :  { %v1143_v60 = vmul.f32 %v1094_v26, %v1094_v26  ;;  %v1160_v43 = vmul.f32 %v1094_v26, %v1093_v3  ;;  %v1406_v6 = vpack.c.bf16 %v1094_v26, %v1093_v3  ;;  %v1145_v42 = vmul.f32 %v1098_v30, %v1098_v30 }
 0x1ab   :  { %v1105_v5 = vadd.f32 %v1104_v44, %v1097_v25  ;;  %v1132_v7 = vadd.f32 %v1131_v54, %v1127_v34  ;;  %v1115_v62 = vadd.f32 %v1114_v59, %v1096_v27  ;;  %v1162_v9 = vmul.f32 %v1098_v30, %v1097_v25 }
 0x1ac   :  { %v1148_v8 = vadd.f32 %v1143_v60, %v1142_v20  ;;  %v1165_v12 = vadd.f32 %v1160_v43, %v1159_v37  ;;  %1223 = vst [vmem:[%s2128_s4 + $0x8] sm:$0xff] %v1406_v6  ;;  %v1408_v45 = vpack.c.bf16 %v1098_v30, %v1097_v25  ;;  %v1087_v51 = vadd.f32 %v2064_v29, %v1022_v46 }
 0x1ad   :  { %v1088_v13 = vadd.f32 %v2072_v57, %v1024_v48  ;;  %v1133_v14 = vadd.f32 %v1132_v7, %v1128_v58  ;;  %v1116_v15 = vadd.f32 %v1115_v62, %v1098_v30  ;;  %v1026_v11 = vadd.f32 %v1025_v50, %v2061_v55 }
 0x1ae   :  { %v1149_v10 = vadd.f32 %v1148_v8, %v1144_v41  ;;  %v1166_v47 = vadd.f32 %v1165_v12, %v1161_v22  ;;  %1225 = vst [vmem:[%s2128_s4 + $0x18] sm:$0xff] %v1408_v45  ;;  %v1099_v52 = vmul.f32 %v1087_v51, %v1913_v1  ;;  %v1028_v18 = vadd.f32 %v1027_v4, %v2067_v56 }
 0x1af   :  { %v1100_v17 = vmul.f32 %v1088_v13, %v1913_v1  ;;  %v1078_v29 = vsel %vm1042_vm0, %v1063_v53, 0.0  ;;  %v1089_v35 = vadd.f32 %v1077_v33, %v1026_v11 }
 0x1b0   :  { %v1150_v57 = vadd.f32 %v1149_v10, %v1145_v42  ;;  %v1167_v23 = vadd.f32 %v1166_v47, %v1162_v9  ;;  %v1106_v16 = vadd.f32 %v1105_v5, %v1099_v52  ;;  %v1129_v55 = vmul.f32 %v1099_v52, %v1099_v52 }
 0x1b1   :  { %v1117_v31 = vadd.f32 %v1116_v15, %v1100_v17  ;;  %v1146_v32 = vmul.f32 %v1100_v17, %v1100_v17  ;;  %v1163_v63 = vmul.f32 %v1100_v17, %v1099_v52  ;;  %v1409_v21 = vpack.c.bf16 %v1100_v17, %v1099_v52 }
 0x1b2   :  { %v1101_v61 = vmul.f32 %v1089_v35, %v1911_v0  ;;  %v1134_v27 = vadd.f32 %v1133_v14, %v1129_v55  ;;  %v1090_v3 = vadd.f32 %v1078_v29, %v1028_v18 }
 0x1b3   :  { %v1151_v1 = vadd.f32 %v1150_v57, %v1146_v32  ;;  %v1168_v24 = vadd.f32 %v1167_v23, %v1163_v63  ;;  %1226 = vst [vmem:[%s2128_s4 + $0x20] sm:$0xff] %v1409_v21 }
 0x1b4   :  { %v1107_v49 = vadd.f32 %v1106_v16, %v1101_v61  ;;  %v1130_v53 = vmul.f32 %v1101_v61, %v1101_v61  ;;  %v1102_v56 = vmul.f32 %v1090_v3, %v1911_v0 }
 0x1b6   :  { %v1108_v33 = vrot.slane %v1107_v49, 4  ;;  %v1135_v2 = vadd.f32 %v1134_v27, %v1130_v53  ;;  %v1118_v34 = vadd.f32 %v1117_v31, %v1102_v56  ;;  %v1147_v37 = vmul.f32 %v1102_v56, %v1102_v56 }
 0x1b7   :  { %v1164_v38 = vmul.f32 %v1102_v56, %v1101_v61  ;;  %v1410_v20 = vpack.c.bf16 %v1102_v56, %v1101_v61 }
 0x1b8   :  { %v1109_v22 = vadd.f32 %v1108_v33, %v1107_v49  ;;  %v1136_v19 = vrot.slane %v1135_v2, 4  ;;  %v1119_v39 = vrot.slane %v1118_v34, 4  ;;  %v1152_v40 = vadd.f32 %v1151_v1, %v1147_v37 }
 0x1b9   :  { %v1169_v28 = vadd.f32 %v1168_v24, %v1164_v38  ;;  %1227 = vst [vmem:[%s2128_s4 + $0x28] sm:$0xff] %v1410_v20 }
 0x1ba   :  { %v1110_v25 = vrot.slane %v1109_v22, 2  ;;  %v1137_v26 = vadd.f32 %v1136_v19, %v1135_v2  ;;  %v1120_v30 = vadd.f32 %v1119_v39, %v1118_v34  ;;  %v1153_v36 = vrot.slane %v1152_v40, 4 }
 0x1bb   :  { %v1170_v0 = vrot.slane %v1169_v28, 4 }
 0x1bc   :  { %v1111_v41 = vadd.f32 %v1110_v25, %v1109_v22  ;;  %v1138_v44 = vrot.slane %v1137_v26, 2  ;;  %v1121_v46 = vrot.slane %v1120_v30, 2  ;;  %v1154_v48 = vadd.f32 %v1153_v36, %v1152_v40 }
 0x1bd   :  { %v1171_v50 = vadd.f32 %v1170_v0, %v1169_v28 }
 0x1be   :  { %v1112_v54 = vrot.slane %v1111_v41, 1  ;;  %v1139_v58 = vadd.f32 %v1138_v44, %v1137_v26  ;;  %v1122_v59 = vadd.f32 %v1121_v46, %v1120_v30  ;;  %v1155_v60 = vrot.slane %v1154_v48, 2 }
 0x1bf   :  { %v1172_v4 = vrot.slane %v1171_v50, 2 }
 0x1c0   :  { %v1140_v5 = vrot.slane %v1139_v58, 1  ;;  %v1113_v43 = vadd.f32 %v1112_v54, %v1111_v41  ;;  %v1123_v6 = vrot.slane %v1122_v59, 1  ;;  %v1156_v42 = vadd.f32 %v1155_v60, %v1154_v48 }
 0x1c1   :  { %v1173_v7 = vadd.f32 %v1172_v4, %v1171_v50 }
 0x1c2   :  { %v1141_v8 = vadd.f32 %v1140_v5, %v1139_v58  ;;  %v1124_v62 = vadd.f32 %v1123_v6, %v1122_v59  ;;  %v1157_v9 = vrot.slane %v1156_v42, 1 }
 0x1c3   :  { %v1174_v12 = vrot.slane %v1173_v7, 1 }
 0x1c4   :  { %v1158_v45 = vadd.f32 %v1157_v9, %v1156_v42  ;;  %v1176_v13 = vsel %vm770_vm1, %v1113_v43, %v1124_v62 }
 0x1c5   :  { %v1175_v51 = vadd.f32 %v1174_v12, %v1173_v7  ;;  %v1178_v14 = vsel %vm1177_vm2, %v1176_v13, %v1141_v8 }
 0x1c6   :  { %v1180_v15 = vsel %vm1179_vm3, %v1178_v14, %v1158_v45 }
 0x1c7   :  { %v1182_v10 = vsel %vm1181_vm4, %v1180_v15, %v1175_v51 }
 0x1c8   :  { %v1184_v11 = vsel %vm1183_vm5, %v1182_v10, 0.0 }
 0x1c9   :  { %1185 = vst [vmem:[%s2129_s5] sm:$0xff] %v1184_v11 }

// kernel: double_conv_forward.5
= control target key start
LH: loop header
LB: loop body
LE: loop exit
PB: predicated region body
PF: predicated region fallthrough
CT: control target
= control target key end

     0   :  { %v225_v0 = vmov 0   ;;  %v34_v7 = vlaneseq  ;;  %s330_s2 = inlined_call_operand.vmem [shape: f32[48,1], index: 2, kind: input, shape index: {}]   ;;  %s331_s0 = inlined_call_operand.vmem [shape: bf16[48,256], index: 0, kind: input, shape index: {}]   ;;  %s332_s1 = inlined_call_operand.vmem [shape: f32[8,256], index: 1, kind: input, shape index: {}]   ;;  %s333_s3 = inlined_call_operand.vmem [shape: f32[48,256], index: 3, kind: output, shape index: {}]  }
   0x1   :  { %224 = vset.pattern.permute.xlu1 %v225_v0  ;;  %223 = vset.pattern.permute.xlu0 %v225_v0  ;;  %v157_v1 = vld [vmem:[%s330_s2 + $0x10] sm:$0xff]  ;;  %v155_v2 = vld [vmem:[%s330_s2] sm:$0xff]  ;;  %v158_v3 = vld [vmem:[%s330_s2 + $0x18] sm:$0xff] }
   0x2   :  { %173 = vperm.xlu1 %224, %v157_v1   ;;  %163 = vperm.xlu0 %223, %v155_v2   ;;  %v156_v4 = vld [vmem:[%s330_s2 + $0x8] sm:$0xff]  ;;  %v159_v6 = vld [vmem:[%s330_s2 + $0x20] sm:$0xff]  ;;  %v35_v8 = vshrl.u32 %v34_v7, 7  ;;  %v16_v11 = vld [vmem:[%s331_s0 + $0x10] sm:$0xff] }
   0x3   :  { %v160_v5 = vld [vmem:[%s330_s2 + $0x28] sm:$0xff]  ;;  %v14_v13 = vld [vmem:[%s331_s0] sm:$0xff]  ;;  %v24_v14 = vunpack.c.l.bf16 %v16_v11  ;;  %v25_v15 = vunpack.c.h.bf16 %v16_v11  ;;  %v17_v18 = vld [vmem:[%s331_s0 + $0x18] sm:$0xff] }
   0x4   :  { %v36_v9 = vsub.s32 0, %v35_v8  ;;  %v40_v10 = vsub.s32 1, %v35_v8  ;;  %v32_v12 = vld [vmem:[%s332_s1] ss:$8 sm:$0x3]  ;;  %v20_v21 = vunpack.c.l.bf16 %v14_v13  ;;  %v21_v22 = vunpack.c.h.bf16 %v14_v13 }
   0x5   :  { %v219_v19 = vld [vmem:[%s332_s1 + $0x1] ss:$8 sm:$0x3]  ;;  %v220_v20 = vld [vmem:[%s332_s1 + $0x2] ss:$8 sm:$0x3]  ;;  %v26_v24 = vunpack.c.l.bf16 %v17_v18  ;;  %v27_v25 = vunpack.c.h.bf16 %v17_v18 }
   0x6   :  { %178 = vperm.xlu1 %224, %v158_v3   ;;  %168 = vperm.xlu0 %223, %v156_v4   ;;  %v37_v16 = vrot.slane %v32_v12, %v36_v9  ;;  %v41_v17 = vrot.slane %v32_v12, %v40_v10  ;;  %v15_v23 = vld [vmem:[%s331_s0 + $0x8] sm:$0xff]  ;;  %v62_v28 = vrot.slane %v219_v19, %v36_v9  ;;  %v18_v41 = vld [vmem:[%s331_s0 + $0x20] sm:$0xff] }
   0x7   :  { %v66_v29 = vrot.slane %v219_v19, %v40_v10  ;;  %v87_v30 = vrot.slane %v220_v20, %v36_v9  ;;  %v91_v31 = vrot.slane %v220_v20, %v40_v10  ;;  %v22_v32 = vunpack.c.l.bf16 %v15_v23  ;;  %v19_v36 = vld [vmem:[%s331_s0 + $0x28] sm:$0xff] }
   0x8   :  { %v48_v26 = vsub.f32 %v24_v14, %v37_v16  ;;  %v49_v27 = vsub.f32 %v25_v15, %v41_v17  ;;  %v23_v33 = vunpack.c.h.bf16 %v15_v23  ;;  %v44_v34 = vsub.f32 %v20_v21, %v37_v16  ;;  %v221_v54 = vld [vmem:[%s332_s1 + $0x3] ss:$8 sm:$0x3] }
   0x9   :  { %v45_v35 = vsub.f32 %v21_v22, %v41_v17  ;;  %v50_v39 = vsub.f32 %v26_v24, %v37_v16  ;;  %v51_v40 = vsub.f32 %v27_v25, %v41_v17  ;;  %v46_v44 = vsub.f32 %v22_v32, %v37_v16 }
   0xa   :  { %188 = vperm.xlu1 %224, %v160_v5   ;;  %183 = vperm.xlu0 %223, %v159_v6   ;;  %v73_v37 = vmul.f32 %v62_v28, %v48_v26  ;;  %v74_v38 = vmul.f32 %v66_v29, %v49_v27  ;;  %v98_v42 = vmul.f32 %v87_v30, %v49_v27  ;;  %v30_v48 = vunpack.c.l.bf16 %v19_v36 }
   0xb   :  { %v99_v43 = vmul.f32 %v91_v31, %v48_v26  ;;  %v47_v45 = vsub.f32 %v23_v33, %v41_v17  ;;  %v69_v46 = vmul.f32 %v62_v28, %v44_v34  ;;  %v70_v47 = vmul.f32 %v66_v29, %v45_v35 }
   0xc   :  { %v31_v49 = vunpack.c.h.bf16 %v19_v36  ;;  %v94_v50 = vmul.f32 %v87_v30, %v45_v35  ;;  %v95_v51 = vmul.f32 %v91_v31, %v44_v34  ;;  %v28_v52 = vunpack.c.l.bf16 %v18_v41 }
   0xd   :  { %v29_v53 = vunpack.c.h.bf16 %v18_v41  ;;  %v75_v55 = vmul.f32 %v62_v28, %v50_v39  ;;  %v76_v56 = vmul.f32 %v66_v29, %v51_v40  ;;  %v100_v57 = vmul.f32 %v87_v30, %v51_v40 }
   0xe   :  { %v101_v58 = vmul.f32 %v91_v31, %v50_v39  ;;  %v71_v59 = vmul.f32 %v62_v28, %v46_v44  ;;  %v72_v60 = vmul.f32 %v66_v29, %v47_v45  ;;  %v96_v61 = vmul.f32 %v87_v30, %v47_v45 }
   0xf   :  { %v97_v62 = vmul.f32 %v91_v31, %v46_v44  ;;  %v54_v63 = vsub.f32 %v30_v48, %v37_v16  ;;  %v55_v0 = vsub.f32 %v31_v49, %v41_v17  ;;  %v124_v1 = vrot.slane %v221_v54, %v36_v9 }
  0x10   :  { %v128_v2 = vrot.slane %v221_v54, %v40_v10  ;;  %v52_v3 = vsub.f32 %v28_v52, %v37_v16  ;;  %v53_v4 = vsub.f32 %v29_v53, %v41_v17  ;;  %v110_v5 = vadd.f32 %v98_v42, %v73_v37 }
  0x11   :  { %v111_v6 = vadd.f32 %v99_v43, %v74_v38  ;;  %v106_v7 = vadd.f32 %v94_v50, %v69_v46  ;;  %v107_v8 = vadd.f32 %v95_v51, %v70_v47  ;;  %v112_v11 = vadd.f32 %v100_v57, %v75_v55 }
  0x12   :  { %v113_v12 = vadd.f32 %v101_v58, %v76_v56  ;;  %v108_v13 = vadd.f32 %v96_v61, %v71_v59  ;;  %v109_v14 = vadd.f32 %v97_v62, %v72_v60  ;;  %v79_v15 = vmul.f32 %v62_v28, %v54_v63 }
  0x13   :  { %v80_v18 = vmul.f32 %v66_v29, %v55_v0  ;;  %v104_v19 = vmul.f32 %v87_v30, %v55_v0  ;;  %v105_v20 = vmul.f32 %v91_v31, %v54_v63  ;;  %v77_v21 = vmul.f32 %v62_v28, %v52_v3 }
  0x14   :  { %v78_v22 = vmul.f32 %v66_v29, %v53_v4  ;;  %v102_v23 = vmul.f32 %v87_v30, %v53_v4  ;;  %v103_v24 = vmul.f32 %v91_v31, %v52_v3  ;;  %v135_v9 = vadd.f32 %v124_v1, %v110_v5 }
  0x15   :  { %v136_v10 = vadd.f32 %v128_v2, %v111_v6  ;;  %v131_v16 = vadd.f32 %v124_v1, %v106_v7  ;;  %v132_v17 = vadd.f32 %v128_v2, %v107_v8  ;;  %v137_v25 = vadd.f32 %v124_v1, %v112_v11 }
  0x16   :  { %v138_v26 = vadd.f32 %v128_v2, %v113_v12  ;;  %v133_v27 = vadd.f32 %v124_v1, %v108_v13  ;;  %v134_v32 = vadd.f32 %v128_v2, %v109_v14  ;;  %v116_v33 = vadd.f32 %v104_v19, %v79_v15 }
  0x17   :  { %v117_v34 = vadd.f32 %v105_v20, %v80_v18  ;;  %v114_v35 = vadd.f32 %v102_v23, %v77_v21  ;;  %v115_v36 = vadd.f32 %v103_v24, %v78_v22  ;;  %v147_v37 = vmax.f32 %v135_v9, 0.0 }
  0x18   :  { %v148_v38 = vmax.f32 %v136_v10, 0.0  ;;  %v143_v39 = vmax.f32 %v131_v16, 0.0  ;;  %v144_v40 = vmax.f32 %v132_v17, 0.0  ;;  %v149_v28 = vmax.f32 %v137_v25, 0.0 }
  0x19   :  { %v150_v29 = vmax.f32 %v138_v26, 0.0  ;;  %v145_v30 = vmax.f32 %v133_v27, 0.0  ;;  %v146_v31 = vmax.f32 %v134_v32, 0.0  ;;  %v141_v43 = vadd.f32 %v124_v1, %v116_v33 }
  0x1a   :  { %v142_v44 = vadd.f32 %v128_v2, %v117_v34  ;;  %v139_v45 = vadd.f32 %v124_v1, %v114_v35  ;;  %v140_v46 = vadd.f32 %v128_v2, %v115_v36 }
  0x1b   :  { %v153_v53 = vmax.f32 %v141_v43, 0.0 }
  0x1c   :  { %v154_v54 = vmax.f32 %v142_v44, 0.0  ;;  %v151_v55 = vmax.f32 %v139_v45, 0.0  ;;  %v152_v56 = vmax.f32 %v140_v46, 0.0 }
  0x81   :  { %v174_v41 = vpop.permute.xlu1 %173  ;;  %v164_v42 = vpop.permute.xlu0 %163 }
  0x82   :  { %v195_v47 = vmul.f32 %v174_v41, %v147_v37  ;;  %v196_v48 = vmul.f32 %v174_v41, %v148_v38  ;;  %v191_v49 = vmul.f32 %v164_v42, %v143_v39  ;;  %v192_v50 = vmul.f32 %v164_v42, %v144_v40 }
  0x84   :  { %207 = vst [vmem:[%s333_s3 + $0x20] sm:$0xff] %v195_v47  ;;  %208 = vst [vmem:[%s333_s3 + $0x28] sm:$0xff] %v196_v48 }
  0x85   :  { %203 = vst [vmem:[%s333_s3] sm:$0xff] %v191_v49  ;;  %204 = vst [vmem:[%s333_s3 + $0x8] sm:$0xff] %v192_v50  ;;  %v179_v51 = vpop.permute.xlu1 %178  ;;  %v169_v52 = vpop.permute.xlu0 %168 }
  0x86   :  { %v197_v57 = vmul.f32 %v179_v51, %v149_v28  ;;  %v198_v58 = vmul.f32 %v179_v51, %v150_v29  ;;  %v193_v59 = vmul.f32 %v169_v52, %v145_v30  ;;  %v194_v60 = vmul.f32 %v169_v52, %v146_v31 }
  0x88   :  { %209 = vst [vmem:[%s333_s3 + $0x30] sm:$0xff] %v197_v57  ;;  %210 = vst [vmem:[%s333_s3 + $0x38] sm:$0xff] %v198_v58 }
  0x89   :  { %205 = vst [vmem:[%s333_s3 + $0x10] sm:$0xff] %v193_v59  ;;  %206 = vst [vmem:[%s333_s3 + $0x18] sm:$0xff] %v194_v60  ;;  %v189_v61 = vpop.permute.xlu1 %188  ;;  %v184_v62 = vpop.permute.xlu0 %183 }
  0x8a   :  { %v201_v63 = vmul.f32 %v189_v61, %v153_v53  ;;  %v202_v0 = vmul.f32 %v189_v61, %v154_v54  ;;  %v199_v1 = vmul.f32 %v184_v62, %v151_v55  ;;  %v200_v2 = vmul.f32 %v184_v62, %v152_v56 }
  0x8c   :  { %213 = vst [vmem:[%s333_s3 + $0x50] sm:$0xff] %v201_v63  ;;  %214 = vst [vmem:[%s333_s3 + $0x58] sm:$0xff] %v202_v0 }
  0x8d   :  { %211 = vst [vmem:[%s333_s3 + $0x40] sm:$0xff] %v199_v1  ;;  %212 = vst [vmem:[%s333_s3 + $0x48] sm:$0xff] %v200_v2 }

// kernel: custom-call.2
= control target key start
LH: loop header
LB: loop body
LE: loop exit
PB: predicated region body
PF: predicated region fallthrough
CT: control target
= control target key end

     0   :  { %s812_s0 = inlined_call_operand.vmem [shape: f32[2,8,16,16], index: 0, kind: input, shape index: {}]   ;;  %s813_s2 = inlined_call_operand.vmem [shape: c64[2,8,16,16], index: 2, kind: output, shape index: {}]   ;;  %s814_s1 = inlined_call_operand.vmem [shape: f32[2,8,16,16], index: 1, kind: input, shape index: {}]  }
   0x1   :  { %v5_v0 = vld [vmem:[%s812_s0] sm:$0xff]  ;;  %v288_v1 = vld [vmem:[%s812_s0 + $0x8] sm:$0xff]  ;;  %v290_v2 = vld [vmem:[%s812_s0 + $0x10] sm:$0xff] }
   0x2   :  { %6 = vst [vmem:[%s813_s2] sm:$0xff] %v5_v0  ;;  %289 = vst [vmem:[%s813_s2 + $0x8] sm:$0xff] %v288_v1  ;;  %v292_v3 = vld [vmem:[%s812_s0 + $0x18] sm:$0xff]  ;;  %v294_v4 = vld [vmem:[%s812_s0 + $0x20] sm:$0xff] }
   0x3   :  { %291 = vst [vmem:[%s813_s2 + $0x10] sm:$0xff] %v290_v2  ;;  %v296_v5 = vld [vmem:[%s812_s0 + $0x28] sm:$0xff]  ;;  %293 = vst [vmem:[%s813_s2 + $0x18] sm:$0xff] %v292_v3  ;;  %v298_v6 = vld [vmem:[%s812_s0 + $0x30] sm:$0xff] }
   0x4   :  { %295 = vst [vmem:[%s813_s2 + $0x20] sm:$0xff] %v294_v4  ;;  %297 = vst [vmem:[%s813_s2 + $0x28] sm:$0xff] %v296_v5  ;;  %v300_v7 = vld [vmem:[%s812_s0 + $0x38] sm:$0xff]  ;;  %v302_v8 = vld [vmem:[%s812_s0 + $0x40] sm:$0xff] }
   0x5   :  { %299 = vst [vmem:[%s813_s2 + $0x30] sm:$0xff] %v298_v6  ;;  %301 = vst [vmem:[%s813_s2 + $0x38] sm:$0xff] %v300_v7  ;;  %v304_v9 = vld [vmem:[%s812_s0 + $0x48] sm:$0xff]  ;;  %v306_v10 = vld [vmem:[%s812_s0 + $0x50] sm:$0xff] }
   0x6   :  { %303 = vst [vmem:[%s813_s2 + $0x40] sm:$0xff] %v302_v8  ;;  %v308_v11 = vld [vmem:[%s812_s0 + $0x58] sm:$0xff]  ;;  %305 = vst [vmem:[%s813_s2 + $0x48] sm:$0xff] %v304_v9  ;;  %v310_v12 = vld [vmem:[%s812_s0 + $0x60] sm:$0xff] }
   0x7   :  { %307 = vst [vmem:[%s813_s2 + $0x50] sm:$0xff] %v306_v10  ;;  %309 = vst [vmem:[%s813_s2 + $0x58] sm:$0xff] %v308_v11  ;;  %v312_v13 = vld [vmem:[%s812_s0 + $0x68] sm:$0xff]  ;;  %v314_v14 = vld [vmem:[%s812_s0 + $0x70] sm:$0xff] }
   0x8   :  { %311 = vst [vmem:[%s813_s2 + $0x60] sm:$0xff] %v310_v12  ;;  %313 = vst [vmem:[%s813_s2 + $0x68] sm:$0xff] %v312_v13  ;;  %v316_v15 = vld [vmem:[%s812_s0 + $0x78] sm:$0xff]  ;;  %v318_v16 = vld [vmem:[%s812_s0 + $0x80] sm:$0xff] }
   0x9   :  { %315 = vst [vmem:[%s813_s2 + $0x70] sm:$0xff] %v314_v14  ;;  %v320_v17 = vld [vmem:[%s812_s0 + $0x88] sm:$0xff]  ;;  %317 = vst [vmem:[%s813_s2 + $0x78] sm:$0xff] %v316_v15  ;;  %v322_v18 = vld [vmem:[%s812_s0 + $0x90] sm:$0xff] }
   0xa   :  { %319 = vst [vmem:[%s813_s2 + $0x80] sm:$0xff] %v318_v16  ;;  %321 = vst [vmem:[%s813_s2 + $0x88] sm:$0xff] %v320_v17  ;;  %v324_v19 = vld [vmem:[%s812_s0 + $0x98] sm:$0xff]  ;;  %v326_v20 = vld [vmem:[%s812_s0 + $0xa0] sm:$0xff] }
   0xb   :  { %323 = vst [vmem:[%s813_s2 + $0x90] sm:$0xff] %v322_v18  ;;  %325 = vst [vmem:[%s813_s2 + $0x98] sm:$0xff] %v324_v19  ;;  %v328_v21 = vld [vmem:[%s812_s0 + $0xa8] sm:$0xff]  ;;  %v330_v22 = vld [vmem:[%s812_s0 + $0xb0] sm:$0xff] }
   0xc   :  { %327 = vst [vmem:[%s813_s2 + $0xa0] sm:$0xff] %v326_v20  ;;  %v332_v23 = vld [vmem:[%s812_s0 + $0xb8] sm:$0xff]  ;;  %329 = vst [vmem:[%s813_s2 + $0xa8] sm:$0xff] %v328_v21  ;;  %v334_v24 = vld [vmem:[%s812_s0 + $0xc0] sm:$0xff] }
   0xd   :  { %331 = vst [vmem:[%s813_s2 + $0xb0] sm:$0xff] %v330_v22  ;;  %333 = vst [vmem:[%s813_s2 + $0xb8] sm:$0xff] %v332_v23  ;;  %v336_v25 = vld [vmem:[%s812_s0 + $0xc8] sm:$0xff]  ;;  %v338_v26 = vld [vmem:[%s812_s0 + $0xd0] sm:$0xff] }
   0xe   :  { %335 = vst [vmem:[%s813_s2 + $0xc0] sm:$0xff] %v334_v24  ;;  %337 = vst [vmem:[%s813_s2 + $0xc8] sm:$0xff] %v336_v25  ;;  %v340_v27 = vld [vmem:[%s812_s0 + $0xd8] sm:$0xff]  ;;  %v342_v28 = vld [vmem:[%s812_s0 + $0xe0] sm:$0xff] }
   0xf   :  { %339 = vst [vmem:[%s813_s2 + $0xd0] sm:$0xff] %v338_v26  ;;  %v344_v29 = vld [vmem:[%s812_s0 + $0xe8] sm:$0xff]  ;;  %341 = vst [vmem:[%s813_s2 + $0xd8] sm:$0xff] %v340_v27  ;;  %v346_v30 = vld [vmem:[%s812_s0 + $0xf0] sm:$0xff] }
  0x10   :  { %343 = vst [vmem:[%s813_s2 + $0xe0] sm:$0xff] %v342_v28  ;;  %345 = vst [vmem:[%s813_s2 + $0xe8] sm:$0xff] %v344_v29  ;;  %v348_v31 = vld [vmem:[%s812_s0 + $0xf8] sm:$0xff]  ;;  %v131_v32 = vld [vmem:[%s814_s1] sm:$0xff] }
  0x11   :  { %347 = vst [vmem:[%s813_s2 + $0xf0] sm:$0xff] %v346_v30  ;;  %349 = vst [vmem:[%s813_s2 + $0xf8] sm:$0xff] %v348_v31  ;;  %v351_v33 = vld [vmem:[%s814_s1 + $0x8] sm:$0xff]  ;;  %v353_v34 = vld [vmem:[%s814_s1 + $0x10] sm:$0xff] }
  0x12   :  { %350 = vst [vmem:[%s813_s2 + $0x100] sm:$0xff] %v131_v32  ;;  %v355_v35 = vld [vmem:[%s814_s1 + $0x18] sm:$0xff]  ;;  %352 = vst [vmem:[%s813_s2 + $0x108] sm:$0xff] %v351_v33  ;;  %v357_v36 = vld [vmem:[%s814_s1 + $0x20] sm:$0xff] }
  0x13   :  { %354 = vst [vmem:[%s813_s2 + $0x110] sm:$0xff] %v353_v34  ;;  %356 = vst [vmem:[%s813_s2 + $0x118] sm:$0xff] %v355_v35  ;;  %v359_v37 = vld [vmem:[%s814_s1 + $0x28] sm:$0xff]  ;;  %v361_v38 = vld [vmem:[%s814_s1 + $0x30] sm:$0xff] }
  0x14   :  { %358 = vst [vmem:[%s813_s2 + $0x120] sm:$0xff] %v357_v36  ;;  %360 = vst [vmem:[%s813_s2 + $0x128] sm:$0xff] %v359_v37  ;;  %v363_v39 = vld [vmem:[%s814_s1 + $0x38] sm:$0xff]  ;;  %v365_v40 = vld [vmem:[%s814_s1 + $0x40] sm:$0xff] }
  0x15   :  { %362 = vst [vmem:[%s813_s2 + $0x130] sm:$0xff] %v361_v38  ;;  %v367_v41 = vld [vmem:[%s814_s1 + $0x48] sm:$0xff]  ;;  %364 = vst [vmem:[%s813_s2 + $0x138] sm:$0xff] %v363_v39  ;;  %v369_v42 = vld [vmem:[%s814_s1 + $0x50] sm:$0xff] }
  0x16   :  { %366 = vst [vmem:[%s813_s2 + $0x140] sm:$0xff] %v365_v40  ;;  %368 = vst [vmem:[%s813_s2 + $0x148] sm:$0xff] %v367_v41  ;;  %v371_v43 = vld [vmem:[%s814_s1 + $0x58] sm:$0xff]  ;;  %v373_v44 = vld [vmem:[%s814_s1 + $0x60] sm:$0xff] }
  0x17   :  { %370 = vst [vmem:[%s813_s2 + $0x150] sm:$0xff] %v369_v42  ;;  %372 = vst [vmem:[%s813_s2 + $0x158] sm:$0xff] %v371_v43  ;;  %v375_v45 = vld [vmem:[%s814_s1 + $0x68] sm:$0xff]  ;;  %v377_v46 = vld [vmem:[%s814_s1 + $0x70] sm:$0xff] }
  0x18   :  { %374 = vst [vmem:[%s813_s2 + $0x160] sm:$0xff] %v373_v44  ;;  %v379_v47 = vld [vmem:[%s814_s1 + $0x78] sm:$0xff]  ;;  %376 = vst [vmem:[%s813_s2 + $0x168] sm:$0xff] %v375_v45  ;;  %v381_v48 = vld [vmem:[%s814_s1 + $0x80] sm:$0xff] }
  0x19   :  { %378 = vst [vmem:[%s813_s2 + $0x170] sm:$0xff] %v377_v46  ;;  %380 = vst [vmem:[%s813_s2 + $0x178] sm:$0xff] %v379_v47  ;;  %v383_v49 = vld [vmem:[%s814_s1 + $0x88] sm:$0xff]  ;;  %v385_v50 = vld [vmem:[%s814_s1 + $0x90] sm:$0xff] }
  0x1a   :  { %382 = vst [vmem:[%s813_s2 + $0x180] sm:$0xff] %v381_v48  ;;  %384 = vst [vmem:[%s813_s2 + $0x188] sm:$0xff] %v383_v49  ;;  %v387_v51 = vld [vmem:[%s814_s1 + $0x98] sm:$0xff]  ;;  %v389_v52 = vld [vmem:[%s814_s1 + $0xa0] sm:$0xff] }
  0x1b   :  { %386 = vst [vmem:[%s813_s2 + $0x190] sm:$0xff] %v385_v50  ;;  %v391_v53 = vld [vmem:[%s814_s1 + $0xa8] sm:$0xff]  ;;  %388 = vst [vmem:[%s813_s2 + $0x198] sm:$0xff] %v387_v51  ;;  %v393_v54 = vld [vmem:[%s814_s1 + $0xb0] sm:$0xff] }
  0x1c   :  { %390 = vst [vmem:[%s813_s2 + $0x1a0] sm:$0xff] %v389_v52  ;;  %392 = vst [vmem:[%s813_s2 + $0x1a8] sm:$0xff] %v391_v53  ;;  %v395_v55 = vld [vmem:[%s814_s1 + $0xb8] sm:$0xff]  ;;  %v397_v56 = vld [vmem:[%s814_s1 + $0xc0] sm:$0xff] }
  0x1d   :  { %394 = vst [vmem:[%s813_s2 + $0x1b0] sm:$0xff] %v393_v54  ;;  %396 = vst [vmem:[%s813_s2 + $0x1b8] sm:$0xff] %v395_v55  ;;  %v399_v57 = vld [vmem:[%s814_s1 + $0xc8] sm:$0xff]  ;;  %v401_v58 = vld [vmem:[%s814_s1 + $0xd0] sm:$0xff] }
  0x1e   :  { %398 = vst [vmem:[%s813_s2 + $0x1c0] sm:$0xff] %v397_v56  ;;  %v403_v59 = vld [vmem:[%s814_s1 + $0xd8] sm:$0xff]  ;;  %400 = vst [vmem:[%s813_s2 + $0x1c8] sm:$0xff] %v399_v57  ;;  %v405_v60 = vld [vmem:[%s814_s1 + $0xe0] sm:$0xff] }
  0x1f   :  { %402 = vst [vmem:[%s813_s2 + $0x1d0] sm:$0xff] %v401_v58  ;;  %404 = vst [vmem:[%s813_s2 + $0x1d8] sm:$0xff] %v403_v59  ;;  %v407_v61 = vld [vmem:[%s814_s1 + $0xe8] sm:$0xff]  ;;  %v409_v62 = vld [vmem:[%s814_s1 + $0xf0] sm:$0xff] }
  0x20   :  { %406 = vst [vmem:[%s813_s2 + $0x1e0] sm:$0xff] %v405_v60  ;;  %408 = vst [vmem:[%s813_s2 + $0x1e8] sm:$0xff] %v407_v61  ;;  %v411_v63 = vld [vmem:[%s814_s1 + $0xf8] sm:$0xff] }
  0x21   :  { %410 = vst [vmem:[%s813_s2 + $0x1f0] sm:$0xff] %v409_v62  ;;  %412 = vst [vmem:[%s813_s2 + $0x1f8] sm:$0xff] %v411_v63 }

</bundles_post_ra>
